<compile_context>
chip_gen: v7x
topology: tpu7x:2x2x1
jax: 0.10.0
libtpu: 0.0.40
codegen_flags: <defaults>
</compile_context>

<pallas_src>
import functools

import jax
import jax.numpy as jnp
from jax.experimental import pallas as pl
from jax.experimental.pallas import tpu as pltpu  # noqa: F401  (TPU backend)

# ---- module hyper-params (small, consistent with the module's __init__) ----
D_MODEL = 32
NHEAD = 4
DIM_FF = 64
HEAD_DIM = D_MODEL // NHEAD
LN_EPS = 1e-5
SEQ_LEN = 16
BATCH = 2

# packed weight-slab geometry (lane blocks start at multiples of 128)
W_ROWS, W_COLS = 64, 384


def encoder_layer_kernel(x_ref, pos_ref, w_ref, o_ref, *, n_batch):
    NL, E = x_ref.shape                      # (32, 32) seq-major rows (l*N + n)
    H, Dh = NHEAD, E // NHEAD
    F = DIM_FF

    x = x_ref[...]
    pos = pos_ref[...]
    xp = x + pos                             # q = k = src + pos

    # ---- unpack the weight slab (all slices sublane/lane-block aligned) ----
    wvo = w_ref[0:E, 0:H * E]                # (E, H*E)  V-proj with Wo folded in
    wqk = w_ref[0:E, 128:128 + 2 * E]        # (E, 2E)   [Wq*scale | Wk]
    w1 = w_ref[E:2 * E, 128:128 + F]         # (E, F)    linear1^T
    w2 = w_ref[0:F, 256:256 + E]             # (F, E)    linear2^T
    vec = w_ref[32:40, 0:128]                # 8 packed bias / LayerNorm vectors

    qk_b = vec[0:1, 0:2 * E]
    out_b = vec[1:2, 0:E]
    lin1_b = vec[2:3, 0:F]
    lin2_b = vec[3:4, 0:E]
    ln1_g = vec[4:5, 0:E]
    ln1_b = vec[5:6, 0:E]
    ln2_g = vec[6:7, 0:E]
    ln2_b = vec[7:8, 0:E]

    # ---- projections: q/k from x+pos, value(+out-proj) from x ---------------
    qk = jnp.dot(xp, wqk, preferred_element_type=jnp.float32) + qk_b      # (NL, 2E)
    vprime = jnp.dot(x, wvo, preferred_element_type=jnp.float32)          # (NL, H*E)

    # ---- same-batch additive mask over the seq-major interleaved rows ------
    ri = jax.lax.broadcasted_iota(jnp.int32, (NL, NL), 0)
    ci = jax.lax.broadcasted_iota(jnp.int32, (NL, NL), 1)
    if n_batch & (n_batch - 1) == 0:         # power-of-two batch -> cheap AND
        rb, cb = ri & (n_batch - 1), ci & (n_batch - 1)
    else:
        rb, cb = ri % n_batch, ci % n_batch
    mask_bias = jnp.where(rb == cb, 0.0, -1e30).astype(jnp.float32)       # (NL, NL)

    # ---- per-head attention (out-projection already folded into vprime) ----
    attn = jnp.zeros((NL, E), jnp.float32)
    for h in range(H):
        c0 = h * Dh
        qh = qk[:, c0:c0 + Dh]                                            # (NL, Dh) pre-scaled
        kh = qk[:, E + c0:E + c0 + Dh]                                    # (NL, Dh)
        s = jax.lax.dot_general(qh, kh, (((1,), (1,)), ((), ())),
                                preferred_element_type=jnp.float32)       # (NL, NL)
        s = s + mask_bias
        s = s - jnp.max(s, axis=-1, keepdims=True)
        p = jnp.exp(s)
        p = p * pl.reciprocal(jnp.sum(p, axis=-1, keepdims=True), approx=True)
        attn = attn + jnp.dot(p, vprime[:, h * E:(h + 1) * E],
                              preferred_element_type=jnp.float32)
    attn = attn + out_b

    # ---- residual + LayerNorm1 (dropout1 = identity) ------------------------
    x1 = x + attn
    mu1 = jnp.mean(x1, axis=-1, keepdims=True)
    var1 = jnp.mean((x1 - mu1) ** 2, axis=-1, keepdims=True)
    x1n = (x1 - mu1) * jax.lax.rsqrt(var1 + LN_EPS) * ln1_g + ln1_b

    # ---- FFN: linear2(relu(linear1(x)))  (dropout = identity) --------------
    hid = jnp.dot(x1n, w1, preferred_element_type=jnp.float32) + lin1_b
    hid = jnp.maximum(hid, 0.0)
    ff = jnp.dot(hid, w2, preferred_element_type=jnp.float32) + lin2_b

    # ---- residual + LayerNorm2 (dropout2 = identity) ------------------------
    x2 = x1n + ff
    mu2 = jnp.mean(x2, axis=-1, keepdims=True)
    var2 = jnp.mean((x2 - mu2) ** 2, axis=-1, keepdims=True)
    o_ref[...] = (x2 - mu2) * jax.lax.rsqrt(var2 + LN_EPS) * ln2_g + ln2_b


def prepack_params(params):
    """One-time weight re-layout into a single lane-aligned slab (hot-path free)."""
    E, F, H, Dh = D_MODEL, DIM_FF, NHEAD, HEAD_DIM
    assert 2 * E <= 128 and F <= 128 and H * E <= 128
    assert 2 * E <= W_ROWS and F <= W_ROWS and W_ROWS >= 40
    scale = 1.0 / (Dh ** 0.5)

    in_w, in_b, out_w = params["in_w"], params["in_b"], params["out_w"]
    wq_t = in_w[0:E].T * scale                  # 1/sqrt(Dh) folded into Wq / bq
    wk_t = in_w[E:2 * E].T
    wv_t = in_w[2 * E:3 * E].T
    wqk = jnp.concatenate([wq_t, wk_t], axis=1)                    # (E, 2E)
    qk_b = jnp.concatenate([in_b[0:E] * scale, in_b[E:2 * E]])     # (2E,)

    # Fold the out-projection into the V projection: Wvo_h = Wv_h^T @ Wo_h.
    wvo = jnp.concatenate(
        [wv_t[:, h * Dh:(h + 1) * Dh] @ out_w[:, h * Dh:(h + 1) * Dh].T
         for h in range(H)], axis=1)                               # (E, H*E)
    # Value bias folded through the out-projection (softmax rows sum to ~1).
    out_b_folded = params["out_b"] + in_b[2 * E:3 * E] @ out_w.T   # (E,)

    w1_t = params["lin1_w"].T                                      # (E, F)
    w2_t = params["lin2_w"].T                                      # (F, E)

    w = jnp.zeros((W_ROWS, W_COLS), jnp.float32)
    w = w.at[0:E, 0:H * E].set(wvo)
    w = w.at[0:E, 128:128 + 2 * E].set(wqk)
    w = w.at[E:2 * E, 128:128 + F].set(w1_t)
    w = w.at[0:F, 256:256 + E].set(w2_t)
    # 8 small bias / LayerNorm vectors packed at rows 32:40 of lane-block 0.
    w = w.at[32, 0:2 * E].set(qk_b)
    w = w.at[33, 0:E].set(out_b_folded)
    w = w.at[34, 0:F].set(params["lin1_b"])
    w = w.at[35, 0:E].set(params["lin2_b"])
    w = w.at[36, 0:E].set(params["ln1_g"])
    w = w.at[37, 0:E].set(params["ln1_b"])
    w = w.at[38, 0:E].set(params["ln2_g"])
    w = w.at[39, 0:E].set(params["ln2_b"])
    return w


@jax.jit
def transformer_encoder_layer(src_lne, pos_lne, wslab):
    """src_lne, pos_lne: (L, N, E) f32; wslab: prepacked (64, 384) weight slab."""
    L, N, E = src_lne.shape
    x2d = src_lne.reshape(L * N, E)        # free reshape; seq-major rows l*N + n
    p2d = pos_lne.reshape(L * N, E)
    out2d = pl.pallas_call(
        functools.partial(encoder_layer_kernel, n_batch=N),
        out_shape=jax.ShapeDtypeStruct((L * N, E), jnp.float32),
    )(x2d, p2d, wslab)
    return out2d.reshape(L, N, E)          # free reshape back to (L, N, E)


# ---------------- pure-JAX reference (PyTorch forward_post semantics) -------
def reference_layer(src_lne, pos_lne, params):
    E = D_MODEL

    def per_batch(x, pos):  # x, pos: (L, E)
        qk = x + pos
        wq, wk, wv = (params["in_w"][0:E], params["in_w"][E:2 * E],
                      params["in_w"][2 * E:3 * E])
        bq, bk, bv = (params["in_b"][0:E], params["in_b"][E:2 * E],
                      params["in_b"][2 * E:3 * E])
        q = (qk @ wq.T + bq) / (HEAD_DIM ** 0.5)
        k = qk @ wk.T + bk
        v = x @ wv.T + bv
        L = x.shape[0]
        qh = q.reshape(L, NHEAD, HEAD_DIM)
        kh = k.reshape(L, NHEAD, HEAD_DIM)
        vh = v.reshape(L, NHEAD, HEAD_DIM)
        s = jnp.einsum("qhd,khd->hqk", qh, kh)
        p = jax.nn.softmax(s, axis=-1)
        ctx = jnp.einsum("hqk,khd->qhd", p, vh).reshape(L, E)
        attn = ctx @ params["out_w"].T + params["out_b"]

        x1 = x + attn
        x1n = (x1 - x1.mean(-1, keepdims=True)) * jax.lax.rsqrt(
            x1.var(-1, keepdims=True) + LN_EPS)
        x1n = x1n * params["ln1_g"] + params["ln1_b"]

        hid = jnp.maximum(x1n @ params["lin1_w"].T + params["lin1_b"], 0.0)
        ff = hid @ params["lin2_w"].T + params["lin2_b"]

        x2 = x1n + ff
        x2n = (x2 - x2.mean(-1, keepdims=True)) * jax.lax.rsqrt(
            x2.var(-1, keepdims=True) + LN_EPS)
        return x2n * params["ln2_g"] + params["ln2_b"]

    return jax.vmap(per_batch, in_axes=(1, 1), out_axes=1)(src_lne, pos_lne)


def init_params(key):
    ks = jax.random.split(key, 8)
    s = 0.1
    return {
        "in_w":  s * jax.random.normal(ks[0], (3 * D_MODEL, D_MODEL), jnp.float32),
        "in_b":  s * jax.random.normal(ks[1], (3 * D_MODEL,), jnp.float32),
        "out_w": s * jax.random.normal(ks[2], (D_MODEL, D_MODEL), jnp.float32),
        "out_b": s * jax.random.normal(ks[3], (D_MODEL,), jnp.float32),
        "lin1_w": s * jax.random.normal(ks[4], (DIM_FF, D_MODEL), jnp.float32),
        "lin1_b": s * jax.random.normal(ks[5], (DIM_FF,), jnp.float32),
        "lin2_w": s * jax.random.normal(ks[6], (D_MODEL, DIM_FF), jnp.float32),
        "lin2_b": s * jax.random.normal(ks[7], (D_MODEL,), jnp.float32),
        "ln1_g": jnp.ones((D_MODEL,), jnp.float32),
        "ln1_b": jnp.zeros((D_MODEL,), jnp.float32),
        "ln2_g": jnp.ones((D_MODEL,), jnp.float32),
        "ln2_b": jnp.zeros((D_MODEL,), jnp.float32),
    }


if __name__ == "__main__":
    key = jax.random.PRNGKey(0)
    k1, k2, k3 = jax.random.split(key, 3)
    src = jax.random.normal(k1, (SEQ_LEN, BATCH, D_MODEL), jnp.float32)
    pos = jax.random.normal(k2, (SEQ_LEN, BATCH, D_MODEL), jnp.float32)
    params = init_params(k3)

    # One-time prepack (hoisted out of the per-call hot path).
    wslab = jax.block_until_ready(prepack_params(params))

    out = transformer_encoder_layer(src, pos, wslab)
    out = jax.block_until_ready(out)

    ref = reference_layer(src, pos, params)
    assert out.shape == (SEQ_LEN, BATCH, D_MODEL)
    # tolerance accounts for the EUP approx reciprocal in softmax (and the
    # value-bias fold through the out-projection, which relies on rows ~1).
    err = float(jnp.max(jnp.abs(out - ref)))
    assert jnp.allclose(out, ref, atol=1e-3, rtol=1e-3), err
    print("KERNEL_OK")
</pallas_src>

<mosaic_0001>
module attributes {stable_mosaic.version = 11 : i64} {
  func.func @encoder_layer_kernel(%arg0: memref<32x32xf32, #tpu.memory_space<vmem>>, %arg1: memref<32x32xf32, #tpu.memory_space<vmem>>, %arg2: memref<64x384xf32, #tpu.memory_space<vmem>>, %arg3: memref<32x32xf32, #tpu.memory_space<vmem>>) attributes {dimension_semantics = [], scalar_prefetch = 0 : i64, scratch_operands = 0 : i64, tpu.core_type = #tpu.core_type<tc>} {
    %c0 = arith.constant 0 : index
    %c0_0 = arith.constant 0 : index
    %0 = vector.load %arg0[%c0, %c0_0] : memref<32x32xf32, #tpu.memory_space<vmem>>, vector<32x32xf32>
    %c0_1 = arith.constant 0 : index
    %c0_2 = arith.constant 0 : index
    %1 = vector.load %arg1[%c0_1, %c0_2] : memref<32x32xf32, #tpu.memory_space<vmem>>, vector<32x32xf32>
    %2 = arith.addf %0, %1 : vector<32x32xf32>
    %c0_3 = arith.constant 0 : index
    %c0_4 = arith.constant 0 : index
    %3 = vector.load %arg2[%c0_3, %c0_4] : memref<64x384xf32, #tpu.memory_space<vmem>>, vector<32x128xf32>
    %c0_5 = arith.constant 0 : index
    %c128 = arith.constant 128 : index
    %4 = vector.load %arg2[%c0_5, %c128] : memref<64x384xf32, #tpu.memory_space<vmem>>, vector<32x64xf32>
    %c32 = arith.constant 32 : index
    %c128_6 = arith.constant 128 : index
    %5 = vector.load %arg2[%c32, %c128_6] : memref<64x384xf32, #tpu.memory_space<vmem>>, vector<32x64xf32>
    %c0_7 = arith.constant 0 : index
    %c256 = arith.constant 256 : index
    %6 = vector.load %arg2[%c0_7, %c256] : memref<64x384xf32, #tpu.memory_space<vmem>>, vector<64x32xf32>
    %c32_8 = arith.constant 32 : index
    %c0_9 = arith.constant 0 : index
    %7 = vector.load %arg2[%c32_8, %c0_9] : memref<64x384xf32, #tpu.memory_space<vmem>>, vector<8x128xf32>
    %8 = vector.extract_strided_slice %7 {offsets = [0, 0], sizes = [1, 64], strides = [1, 1]} : vector<8x128xf32> to vector<1x64xf32>
    %9 = vector.extract_strided_slice %7 {offsets = [1, 0], sizes = [1, 32], strides = [1, 1]} : vector<8x128xf32> to vector<1x32xf32>
    %10 = vector.extract_strided_slice %7 {offsets = [2, 0], sizes = [1, 64], strides = [1, 1]} : vector<8x128xf32> to vector<1x64xf32>
    %11 = vector.extract_strided_slice %7 {offsets = [3, 0], sizes = [1, 32], strides = [1, 1]} : vector<8x128xf32> to vector<1x32xf32>
    %12 = vector.extract_strided_slice %7 {offsets = [4, 0], sizes = [1, 32], strides = [1, 1]} : vector<8x128xf32> to vector<1x32xf32>
    %13 = vector.extract_strided_slice %7 {offsets = [5, 0], sizes = [1, 32], strides = [1, 1]} : vector<8x128xf32> to vector<1x32xf32>
    %14 = vector.extract_strided_slice %7 {offsets = [6, 0], sizes = [1, 32], strides = [1, 1]} : vector<8x128xf32> to vector<1x32xf32>
    %15 = vector.extract_strided_slice %7 {offsets = [7, 0], sizes = [1, 32], strides = [1, 1]} : vector<8x128xf32> to vector<1x32xf32>
    %cst = arith.constant dense<0.000000e+00> : vector<32x64xf32>
    %16 = tpu.matmul %2, %4, %cst {dimension_numbers = #tpu.dot_dimension_numbers<[1], [0], [0], [1], [0, 0, 1, 1], [], []>} : vector<32x32xf32>, vector<32x64xf32>, vector<32x64xf32> -> vector<32x64xf32>
    %17 = vector.broadcast %8 : vector<1x64xf32> to vector<32x64xf32>
    %18 = arith.addf %16, %17 : vector<32x64xf32>
    %cst_10 = arith.constant dense<0.000000e+00> : vector<32x128xf32>
    %19 = tpu.matmul %0, %3, %cst_10 {dimension_numbers = #tpu.dot_dimension_numbers<[1], [0], [0], [1], [0, 0, 1, 1], [], []>} : vector<32x32xf32>, vector<32x128xf32>, vector<32x128xf32> -> vector<32x128xf32>
    %20 = tpu.iota {dimensions = array<i32: 0>} : vector<32x32xi32>
    %21 = tpu.iota {dimensions = array<i32: 1>} : vector<32x32xi32>
    %c1_i32 = arith.constant 1 : i32
    %22 = vector.broadcast %c1_i32 : i32 to vector<32x32xi32>
    %23 = arith.andi %20, %22 : vector<32x32xi32>
    %c1_i32_11 = arith.constant 1 : i32
    %24 = vector.broadcast %c1_i32_11 : i32 to vector<32x32xi32>
    %25 = arith.andi %21, %24 : vector<32x32xi32>
    %26 = arith.cmpi eq, %23, %25 : vector<32x32xi32>
    %cst_12 = arith.constant 0.000000e+00 : f32
    %cst_13 = arith.constant -1.000000e+30 : f32
    %27 = vector.broadcast %cst_12 : f32 to vector<32x32xf32>
    %28 = vector.broadcast %cst_13 : f32 to vector<32x32xf32>
    %29 = arith.select %26, %27, %28 : vector<32x32xi1>, vector<32x32xf32>
    %cst_14 = arith.constant 0.000000e+00 : f32
    %30 = vector.broadcast %cst_14 : f32 to vector<32x32xf32>
    %31 = vector.extract_strided_slice %18 {offsets = [0, 0], sizes = [32, 8], strides = [1, 1]} : vector<32x64xf32> to vector<32x8xf32>
    %32 = vector.extract_strided_slice %18 {offsets = [0, 32], sizes = [32, 8], strides = [1, 1]} : vector<32x64xf32> to vector<32x8xf32>
    %cst_15 = arith.constant dense<0.000000e+00> : vector<32x32xf32>
    %33 = tpu.matmul %31, %32, %cst_15 {dimension_numbers = #tpu.dot_dimension_numbers<[1], [1], [0], [0], [0, 0, 1, 0], [], []>} : vector<32x8xf32>, vector<32x8xf32>, vector<32x32xf32> -> vector<32x32xf32>
    %34 = arith.addf %33, %29 : vector<32x32xf32>
    %cst_16 = arith.constant dense<0xFF800000> : vector<32xf32>
    %35 = vector.multi_reduction <maximumf>, %34, %cst_16 [1] : vector<32x32xf32> to vector<32xf32>
    %36 = vector.shape_cast %35 : vector<32xf32> to vector<32x1xf32>
    %37 = vector.broadcast %36 : vector<32x1xf32> to vector<32x32xf32>
    %38 = arith.subf %34, %37 : vector<32x32xf32>
    %39 = math.exp %38 : vector<32x32xf32>
    %cst_17 = arith.constant dense<0.000000e+00> : vector<32xf32>
    %40 = vector.multi_reduction <add>, %39, %cst_17 [1] : vector<32x32xf32> to vector<32xf32>
    %41 = vector.shape_cast %40 : vector<32xf32> to vector<32x1xf32>
    %42 = tpu.reciprocal %41 {approx = true} : vector<32x1xf32> -> vector<32x1xf32>
    %43 = vector.broadcast %42 : vector<32x1xf32> to vector<32x32xf32>
    %44 = arith.mulf %39, %43 : vector<32x32xf32>
    %45 = vector.extract_strided_slice %19 {offsets = [0, 0], sizes = [32, 32], strides = [1, 1]} : vector<32x128xf32> to vector<32x32xf32>
    %cst_18 = arith.constant dense<0.000000e+00> : vector<32x32xf32>
    %46 = tpu.matmul %44, %45, %cst_18 {dimension_numbers = #tpu.dot_dimension_numbers<[1], [0], [0], [1], [0, 0, 1, 1], [], []>} : vector<32x32xf32>, vector<32x32xf32>, vector<32x32xf32> -> vector<32x32xf32>
    %47 = arith.addf %30, %46 : vector<32x32xf32>
    %48 = vector.extract_strided_slice %18 {offsets = [0, 8], sizes = [32, 8], strides = [1, 1]} : vector<32x64xf32> to vector<32x8xf32>
    %49 = vector.extract_strided_slice %18 {offsets = [0, 40], sizes = [32, 8], strides = [1, 1]} : vector<32x64xf32> to vector<32x8xf32>
    %cst_19 = arith.constant dense<0.000000e+00> : vector<32x32xf32>
    %50 = tpu.matmul %48, %49, %cst_19 {dimension_numbers = #tpu.dot_dimension_numbers<[1], [1], [0], [0], [0, 0, 1, 0], [], []>} : vector<32x8xf32>, vector<32x8xf32>, vector<32x32xf32> -> vector<32x32xf32>
    %51 = arith.addf %50, %29 : vector<32x32xf32>
    %cst_20 = arith.constant dense<0xFF800000> : vector<32xf32>
    %52 = vector.multi_reduction <maximumf>, %51, %cst_20 [1] : vector<32x32xf32> to vector<32xf32>
    %53 = vector.shape_cast %52 : vector<32xf32> to vector<32x1xf32>
    %54 = vector.broadcast %53 : vector<32x1xf32> to vector<32x32xf32>
    %55 = arith.subf %51, %54 : vector<32x32xf32>
    %56 = math.exp %55 : vector<32x32xf32>
    %cst_21 = arith.constant dense<0.000000e+00> : vector<32xf32>
    %57 = vector.multi_reduction <add>, %56, %cst_21 [1] : vector<32x32xf32> to vector<32xf32>
    %58 = vector.shape_cast %57 : vector<32xf32> to vector<32x1xf32>
    %59 = tpu.reciprocal %58 {approx = true} : vector<32x1xf32> -> vector<32x1xf32>
    %60 = vector.broadcast %59 : vector<32x1xf32> to vector<32x32xf32>
    %61 = arith.mulf %56, %60 : vector<32x32xf32>
    %62 = vector.extract_strided_slice %19 {offsets = [0, 32], sizes = [32, 32], strides = [1, 1]} : vector<32x128xf32> to vector<32x32xf32>
    %cst_22 = arith.constant dense<0.000000e+00> : vector<32x32xf32>
    %63 = tpu.matmul %61, %62, %cst_22 {dimension_numbers = #tpu.dot_dimension_numbers<[1], [0], [0], [1], [0, 0, 1, 1], [], []>} : vector<32x32xf32>, vector<32x32xf32>, vector<32x32xf32> -> vector<32x32xf32>
    %64 = arith.addf %47, %63 : vector<32x32xf32>
    %65 = vector.extract_strided_slice %18 {offsets = [0, 16], sizes = [32, 8], strides = [1, 1]} : vector<32x64xf32> to vector<32x8xf32>
    %66 = vector.extract_strided_slice %18 {offsets = [0, 48], sizes = [32, 8], strides = [1, 1]} : vector<32x64xf32> to vector<32x8xf32>
    %cst_23 = arith.constant dense<0.000000e+00> : vector<32x32xf32>
    %67 = tpu.matmul %65, %66, %cst_23 {dimension_numbers = #tpu.dot_dimension_numbers<[1], [1], [0], [0], [0, 0, 1, 0], [], []>} : vector<32x8xf32>, vector<32x8xf32>, vector<32x32xf32> -> vector<32x32xf32>
    %68 = arith.addf %67, %29 : vector<32x32xf32>
    %cst_24 = arith.constant dense<0xFF800000> : vector<32xf32>
    %69 = vector.multi_reduction <maximumf>, %68, %cst_24 [1] : vector<32x32xf32> to vector<32xf32>
    %70 = vector.shape_cast %69 : vector<32xf32> to vector<32x1xf32>
    %71 = vector.broadcast %70 : vector<32x1xf32> to vector<32x32xf32>
    %72 = arith.subf %68, %71 : vector<32x32xf32>
    %73 = math.exp %72 : vector<32x32xf32>
    %cst_25 = arith.constant dense<0.000000e+00> : vector<32xf32>
    %74 = vector.multi_reduction <add>, %73, %cst_25 [1] : vector<32x32xf32> to vector<32xf32>
    %75 = vector.shape_cast %74 : vector<32xf32> to vector<32x1xf32>
    %76 = tpu.reciprocal %75 {approx = true} : vector<32x1xf32> -> vector<32x1xf32>
    %77 = vector.broadcast %76 : vector<32x1xf32> to vector<32x32xf32>
    %78 = arith.mulf %73, %77 : vector<32x32xf32>
    %79 = vector.extract_strided_slice %19 {offsets = [0, 64], sizes = [32, 32], strides = [1, 1]} : vector<32x128xf32> to vector<32x32xf32>
    %cst_26 = arith.constant dense<0.000000e+00> : vector<32x32xf32>
    %80 = tpu.matmul %78, %79, %cst_26 {dimension_numbers = #tpu.dot_dimension_numbers<[1], [0], [0], [1], [0, 0, 1, 1], [], []>} : vector<32x32xf32>, vector<32x32xf32>, vector<32x32xf32> -> vector<32x32xf32>
    %81 = arith.addf %64, %80 : vector<32x32xf32>
    %82 = vector.extract_strided_slice %18 {offsets = [0, 24], sizes = [32, 8], strides = [1, 1]} : vector<32x64xf32> to vector<32x8xf32>
    %83 = vector.extract_strided_slice %18 {offsets = [0, 56], sizes = [32, 8], strides = [1, 1]} : vector<32x64xf32> to vector<32x8xf32>
    %cst_27 = arith.constant dense<0.000000e+00> : vector<32x32xf32>
    %84 = tpu.matmul %82, %83, %cst_27 {dimension_numbers = #tpu.dot_dimension_numbers<[1], [1], [0], [0], [0, 0, 1, 0], [], []>} : vector<32x8xf32>, vector<32x8xf32>, vector<32x32xf32> -> vector<32x32xf32>
    %85 = arith.addf %84, %29 : vector<32x32xf32>
    %cst_28 = arith.constant dense<0xFF800000> : vector<32xf32>
    %86 = vector.multi_reduction <maximumf>, %85, %cst_28 [1] : vector<32x32xf32> to vector<32xf32>
    %87 = vector.shape_cast %86 : vector<32xf32> to vector<32x1xf32>
    %88 = vector.broadcast %87 : vector<32x1xf32> to vector<32x32xf32>
    %89 = arith.subf %85, %88 : vector<32x32xf32>
    %90 = math.exp %89 : vector<32x32xf32>
    %cst_29 = arith.constant dense<0.000000e+00> : vector<32xf32>
    %91 = vector.multi_reduction <add>, %90, %cst_29 [1] : vector<32x32xf32> to vector<32xf32>
    %92 = vector.shape_cast %91 : vector<32xf32> to vector<32x1xf32>
    %93 = tpu.reciprocal %92 {approx = true} : vector<32x1xf32> -> vector<32x1xf32>
    %94 = vector.broadcast %93 : vector<32x1xf32> to vector<32x32xf32>
    %95 = arith.mulf %90, %94 : vector<32x32xf32>
    %96 = vector.extract_strided_slice %19 {offsets = [0, 96], sizes = [32, 32], strides = [1, 1]} : vector<32x128xf32> to vector<32x32xf32>
    %cst_30 = arith.constant dense<0.000000e+00> : vector<32x32xf32>
    %97 = tpu.matmul %95, %96, %cst_30 {dimension_numbers = #tpu.dot_dimension_numbers<[1], [0], [0], [1], [0, 0, 1, 1], [], []>} : vector<32x32xf32>, vector<32x32xf32>, vector<32x32xf32> -> vector<32x32xf32>
    %98 = arith.addf %81, %97 : vector<32x32xf32>
    %99 = vector.broadcast %9 : vector<1x32xf32> to vector<32x32xf32>
    %100 = arith.addf %98, %99 : vector<32x32xf32>
    %101 = arith.addf %0, %100 : vector<32x32xf32>
    %cst_31 = arith.constant dense<0.000000e+00> : vector<32xf32>
    %102 = vector.multi_reduction <add>, %101, %cst_31 [1] : vector<32x32xf32> to vector<32xf32>
    %103 = vector.shape_cast %102 : vector<32xf32> to vector<32x1xf32>
    %cst_32 = arith.constant 3.200000e+01 : f32
    %104 = vector.broadcast %cst_32 : f32 to vector<32x1xf32>
    %105 = arith.divf %103, %104 : vector<32x1xf32>
    %106 = vector.broadcast %105 : vector<32x1xf32> to vector<32x32xf32>
    %107 = arith.subf %101, %106 : vector<32x32xf32>
    %108 = arith.mulf %107, %107 : vector<32x32xf32>
    %cst_33 = arith.constant dense<0.000000e+00> : vector<32xf32>
    %109 = vector.multi_reduction <add>, %108, %cst_33 [1] : vector<32x32xf32> to vector<32xf32>
    %110 = vector.shape_cast %109 : vector<32xf32> to vector<32x1xf32>
    %cst_34 = arith.constant 3.200000e+01 : f32
    %111 = vector.broadcast %cst_34 : f32 to vector<32x1xf32>
    %112 = arith.divf %110, %111 : vector<32x1xf32>
    %113 = vector.broadcast %105 : vector<32x1xf32> to vector<32x32xf32>
    %114 = arith.subf %101, %113 : vector<32x32xf32>
    %cst_35 = arith.constant 9.99999974E-6 : f32
    %115 = vector.broadcast %cst_35 : f32 to vector<32x1xf32>
    %116 = arith.addf %112, %115 : vector<32x1xf32>
    %117 = math.rsqrt %116 : vector<32x1xf32>
    %118 = vector.broadcast %117 : vector<32x1xf32> to vector<32x32xf32>
    %119 = arith.mulf %114, %118 : vector<32x32xf32>
    %120 = vector.broadcast %12 : vector<1x32xf32> to vector<32x32xf32>
    %121 = arith.mulf %119, %120 : vector<32x32xf32>
    %122 = vector.broadcast %13 : vector<1x32xf32> to vector<32x32xf32>
    %123 = arith.addf %121, %122 : vector<32x32xf32>
    %cst_36 = arith.constant dense<0.000000e+00> : vector<32x64xf32>
    %124 = tpu.matmul %123, %5, %cst_36 {dimension_numbers = #tpu.dot_dimension_numbers<[1], [0], [0], [1], [0, 0, 1, 1], [], []>} : vector<32x32xf32>, vector<32x64xf32>, vector<32x64xf32> -> vector<32x64xf32>
    %125 = vector.broadcast %10 : vector<1x64xf32> to vector<32x64xf32>
    %126 = arith.addf %124, %125 : vector<32x64xf32>
    %cst_37 = arith.constant 0.000000e+00 : f32
    %127 = vector.broadcast %cst_37 : f32 to vector<32x64xf32>
    %128 = arith.maximumf %126, %127 : vector<32x64xf32>
    %cst_38 = arith.constant dense<0.000000e+00> : vector<32x32xf32>
    %129 = tpu.matmul %128, %6, %cst_38 {dimension_numbers = #tpu.dot_dimension_numbers<[1], [0], [0], [1], [0, 0, 1, 1], [], []>} : vector<32x64xf32>, vector<64x32xf32>, vector<32x32xf32> -> vector<32x32xf32>
    %130 = vector.broadcast %11 : vector<1x32xf32> to vector<32x32xf32>
    %131 = arith.addf %129, %130 : vector<32x32xf32>
    %132 = arith.addf %123, %131 : vector<32x32xf32>
    %cst_39 = arith.constant dense<0.000000e+00> : vector<32xf32>
    %133 = vector.multi_reduction <add>, %132, %cst_39 [1] : vector<32x32xf32> to vector<32xf32>
    %134 = vector.shape_cast %133 : vector<32xf32> to vector<32x1xf32>
    %cst_40 = arith.constant 3.200000e+01 : f32
    %135 = vector.broadcast %cst_40 : f32 to vector<32x1xf32>
    %136 = arith.divf %134, %135 : vector<32x1xf32>
    %137 = vector.broadcast %136 : vector<32x1xf32> to vector<32x32xf32>
    %138 = arith.subf %132, %137 : vector<32x32xf32>
    %139 = arith.mulf %138, %138 : vector<32x32xf32>
    %cst_41 = arith.constant dense<0.000000e+00> : vector<32xf32>
    %140 = vector.multi_reduction <add>, %139, %cst_41 [1] : vector<32x32xf32> to vector<32xf32>
    %141 = vector.shape_cast %140 : vector<32xf32> to vector<32x1xf32>
    %cst_42 = arith.constant 3.200000e+01 : f32
    %142 = vector.broadcast %cst_42 : f32 to vector<32x1xf32>
    %143 = arith.divf %141, %142 : vector<32x1xf32>
    %144 = vector.broadcast %136 : vector<32x1xf32> to vector<32x32xf32>
    %145 = arith.subf %132, %144 : vector<32x32xf32>
    %cst_43 = arith.constant 9.99999974E-6 : f32
    %146 = vector.broadcast %cst_43 : f32 to vector<32x1xf32>
    %147 = arith.addf %143, %146 : vector<32x1xf32>
    %148 = math.rsqrt %147 : vector<32x1xf32>
    %149 = vector.broadcast %148 : vector<32x1xf32> to vector<32x32xf32>
    %150 = arith.mulf %145, %149 : vector<32x32xf32>
    %151 = vector.broadcast %14 : vector<1x32xf32> to vector<32x32xf32>
    %152 = arith.mulf %150, %151 : vector<32x32xf32>
    %153 = vector.broadcast %15 : vector<1x32xf32> to vector<32x32xf32>
    %154 = arith.addf %152, %153 : vector<32x32xf32>
    %c0_44 = arith.constant 0 : index
    %c0_45 = arith.constant 0 : index
    %155 = vector.load %arg3[%c0_44, %c0_45] : memref<32x32xf32, #tpu.memory_space<vmem>>, vector<32x32xf32>
    tpu.vector_store %arg3[%c0_44, %c0_45], %154 {strides = array<i32>} : memref<32x32xf32, #tpu.memory_space<vmem>>, vector<32x32xf32>,
    return
  }
}

</mosaic_0001>

<bundles_post_ra>
// kernel: transformer_encoder_layer.1
= control target key start
LH: loop header
LB: loop body
LE: loop exit
PB: predicated region body
PF: predicated region fallthrough
CT: control target
= control target key end

     0   :  { %8 = vsyncpa [#allocation3], 0  ;;  %s2979_s0 = inlined_call_operand.hbm [shape: f32[32,32], index: 0, kind: input, shape index: {}]   ;;  %s2980_s1 = inlined_call_operand.hbm [shape: f32[32,32], index: 1, kind: input, shape index: {}]   ;;  %s2981_s2 = inlined_call_operand.hbm [shape: f32[64,384], index: 2, kind: input, shape index: {}]   ;;  %s2982_s3 = inlined_call_operand.hbm [shape: f32[32,32], index: 3, kind: output, shape index: {}]  }
   0x1   :  { %9 = vsyncpa [#allocation6], 0 }
   0x2   :  { %10 = vsyncpa [#allocation4], 0  ;;  %s2502_s12 = smov [#allocation5]   ;;  %s2503_s14 = smov [#allocation2]  }
   0x3   :  { %s28_s13 = sshll.u32 %s2502_s12, 4  ;;  %s16_s15 = sshll.u32 %s2503_s14, 4  ;;  %s29_s13 = int_to_ptr.vmem [resolvable:$true] %s28_s13  ;;  %s2540_s15 = int_to_ptr.vmem [resolvable:$true] %s16_s15 }
   0x4   :  { %s2408_s18 = scalar_lea.hbm %s2980_s1, 512 }
   0x5   :  { %p2409_p0 = scmp.ne.s32.totalorder %s2980_s1, %s2408_s18  ;;  %p2412_p1 = scmp.lt.u32.totalorder %s2408_s18, %s2980_s1 }
   0x7   :  { %p2414_p2 = pnand %p2412_p1, %p2409_p0 }
   0x9   :  { %2417 = shalt.err (!%p2414_p2)
}
   0xa   :  { %s2418_s23 = scalar_lea.vmem %s29_s13, 512  ;;  %p2423_p4 = scmp.lt.s32.totalorder %s29_s13, %s29_s13 }
   0xb   :  { %p2419_p3 = scmp.ne.s32.totalorder %s29_s13, %s2418_s23  ;;  %p2424_p5 = scmp.lt.s32.totalorder %s2418_s23, %s2418_s23 }
   0xd   :  { %p2425_p6 = por %p2424_p5, %p2423_p4 }
   0xf   :  { %p2426_p7 = pnand %p2425_p6, %p2419_p3 }
  0x11   :  { %2429 = shalt.err (!%p2426_p7)
}
  0x12   :  { %s2504_s24 = smov 128   ;;  %s2505_s25 = smov 8  }
  0x13   :  { %34 = dma.hbm_to_vmem [thread:$0]  %s2980_s1, 512, %s29_s13, [#allocation6], %s2504_s24, %s2504_s24, %s2505_s25  }
  0x14   :  { %s2430_s30 = scalar_lea.hbm %s2979_s0, 512 }
  0x15   :  { %p2431_p8 = scmp.ne.s32.totalorder %s2979_s0, %s2430_s30  ;;  %p2434_p9 = scmp.lt.u32.totalorder %s2430_s30, %s2979_s0 }
  0x17   :  { %p2436_p10 = pnand %p2434_p9, %p2431_p8 }
  0x19   :  { %2439 = shalt.err (!%p2436_p10)
}
  0x1a   :  { %s2440_s8 = scalar_lea.vmem %s2540_s15, 512  ;;  %p2445_p12 = scmp.lt.s32.totalorder %s2540_s15, %s2540_s15 }
  0x1b   :  { %p2441_p11 = scmp.ne.s32.totalorder %s2540_s15, %s2440_s8  ;;  %p2446_p13 = scmp.lt.s32.totalorder %s2440_s8, %s2440_s8 }
  0x1d   :  { %p2447_p0 = por %p2446_p13, %p2445_p12 }
  0x1f   :  { %p2448_p1 = pnand %p2447_p0, %p2441_p11 }
  0x21   :  { %2451 = shalt.err (!%p2448_p1)
}
  0x22   :  { %22 = dma.hbm_to_vmem [thread:$0]  %s2979_s0, 512, %s2540_s15, [#allocation3], %s2504_s24, %s2504_s24, %s2505_s25  }
  0x23   :  { %s2506_s10 = smov [#allocation7]   ;;  %s2452_s14 = scalar_lea.hbm %s2981_s2, 3072 }
  0x24   :  { %s40_s11 = sshll.u32 %s2506_s10, 4  ;;  %p2453_p2 = scmp.ne.s32.totalorder %s2981_s2, %s2452_s14  ;;  %s41_s11 = int_to_ptr.vmem [resolvable:$true] %s40_s11 }
  0x25   :  { %p2456_p3 = scmp.lt.u32.totalorder %s2452_s14, %s2981_s2 }
  0x27   :  { %p2458_p4 = pnand %p2456_p3, %p2453_p2 }
  0x29   :  { %2461 = shalt.err (!%p2458_p4)
}
  0x2a   :  { %s2462_s20 = scalar_lea.vmem %s41_s11, 3072  ;;  %p2467_p6 = scmp.lt.s32.totalorder %s41_s11, %s41_s11 }
  0x2b   :  { %p2463_p5 = scmp.ne.s32.totalorder %s41_s11, %s2462_s20  ;;  %p2468_p7 = scmp.lt.s32.totalorder %s2462_s20, %s2462_s20 }
  0x2d   :  { %p2469_p8 = por %p2468_p7, %p2467_p6 }
  0x2f   :  { %p2470_p9 = pnand %p2469_p8, %p2463_p5 }
  0x31   :  { %2473 = shalt.err (!%p2470_p9)
}
  0x32   :  { %s2507_s0 = smov 384   ;;  %s2508_s15 = smov 24  }
  0x33   :  { %46 = dma.hbm_to_vmem [thread:$0]  %s2981_s2, 3072, %s41_s11, [#allocation6], %s2507_s0, %s2507_s0, %s2508_s15  }
  0x34   :  { %2496 = dma.done.wait [#allocation3], 512  }
  0x35   :  { %2497 = vsyncadd [#allocation3], 4294966784 }
  0x36   :  { %2498 = dma.done.wait [#allocation6], 3584  }
  0x37   :  { %2499 = vsyncadd [#allocation6], 4294963712  ;;  %v72_v0 = vld [vmem:[#allocation7 + $0x8] sm:$0xff]  ;;  %v73_v1 = vld [vmem:[#allocation7 + $0x20] sm:$0xff]  ;;  %vm93_vm0 = vcmask 261120   ;;  %v89_v24 = vlaneseq  ;;  %vm320_vm1 = vcmask 64512  }
  0x38   :  { %v74_v2 = vld [vmem:[#allocation7 + $0x38] sm:$0xff]  ;;  %v2107_v3 = vpack.c.bf16 %v73_v1, %v72_v0  ;;  %v75_v4 = vld [vmem:[#allocation7 + $0x50] sm:$0xff]  ;;  %v2589_v5 = vld [vmem:[#allocation2] sm:$0xff]  ;;  %s2509_s2 = smov 96   ;;  %s2510_s23 = smov 88   ;;  %vm1575_vm7 = vcmask 523264  }
  0x39   :  { %v60_v6 = vld [vmem:[#allocation5] sm:$0xff]  ;;  %v2111_v7 = vpack.c.bf16 %v75_v4, %v74_v2  ;;  %1953 = vmatprep.mubr.msk.f32.mxu1 %vm93_vm0, %v2589_v5  ;;  %v2595_v9 = vld [vmem:[#allocation2 + $0x8] sm:$0xff]  ;;  %v2597_v11 = vld [vmem:[#allocation2 + $0x10] sm:$0xff]  ;;  %v2614_v25 = vshrl.u32 %v89_v24, 7  ;;  %s2511_s26 = smov 80   ;;  %s2512_s27 = smov 120  }
  0x3a   :  { %v64_v8 = vadd.f32 %v60_v6, %v2589_v5  ;;  %2108 = vmatprep.subr.bf16.mxu0 %v2107_v3  ;;  %v61_v10 = vld [vmem:[#allocation5 + $0x8] sm:$0xff]  ;;  %v62_v12 = vld [vmem:[#allocation5 + $0x10] sm:$0xff]  ;;  %v2601_v15 = vld [vmem:[#allocation2 + $0x18] sm:$0xff]  ;;  %s2513_s28 = smov 112   ;;  %s2514_s29 = smov 72  }
  0x3b   :  { %2110 = vmatpush3.bf16.msra.mxu0 %v2107_v3  ;;  %v65_v13 = vadd.f32 %v61_v10, %v2595_v9  ;;  %v66_v14 = vadd.f32 %v62_v12, %v2597_v11  ;;  %v63_v16 = vld [vmem:[#allocation5 + $0x18] sm:$0xff]  ;;  %v68_v18 = vld [vmem:[#allocation7] sm:$0xff]  ;;  %v70_v20 = vld [vmem:[#allocation7 + $0x30] sm:$0xff]  ;;  %v91_v26 = vsub.s32 0, %v2614_v25  ;;  %s2515_s30 = smov 104   ;;  %s2517_s4 = smov 64  }
  0x3c   :  { %1939 = vmatprep.mubr.msk.f32.mxu0 %vm93_vm0, %v64_v8  ;;  %2112 = vmatprep.subr.bf16.mxu0 %v2111_v7  ;;  %v67_v17 = vadd.f32 %v63_v16, %v2601_v15  ;;  %v69_v19 = vld [vmem:[#allocation7 + $0x18] sm:$0xff]  ;;  %v71_v22 = vld [vmem:[#allocation7 + $0x48] sm:$0xff]  ;;  %v2617_v27 = vld [vmem:[#allocation7 + $0x60] sm:$0xff]  ;;  %v2516_v45 = vmov -1e+30   ;;  %s2518_s5 = smov 32  }
  0x3d   :  { %v2115_v21 = vpack.c.bf16 %v69_v19, %v68_v18  ;;  %v2119_v23 = vpack.c.bf16 %v71_v22, %v70_v20  ;;  %v92_v28 = vrot.slane %v2617_v27, %v91_v26  ;;  %vm2643_vm2 = vmpackc.low %vm320_vm1, %vm320_vm1  ;;  %s2519_s6 = smov [#allocation8]  }
  0x3e   :  { %s1754_s7 = sshll.u32 %s2519_s6, 4  ;;  %s1755_s7 = int_to_ptr.vmem [resolvable:$true] %s1754_s7 }
  0x3f   :  { %2114 = vmatpush3.bf16.msra.mxu0 %v2111_v7  ;;  %2116 = vmatprep.subr.bf16.mxu1 %v2115_v21  ;;  %s2474_s8 = scalar_lea.vmem %s1755_s7, 512  ;;  %p2479_p11 = scmp.lt.s32.totalorder %s1755_s7, %s1755_s7 }
  0x40   :  { %2118 = vmatpush3.bf16.msra.mxu1 %v2115_v21  ;;  %p2475_p10 = scmp.ne.s32.totalorder %s1755_s7, %s2474_s8  ;;  %p2480_p12 = scmp.lt.s32.totalorder %s2474_s8, %s2474_s8 }
  0x41   :  { %2120 = vmatprep.subr.bf16.mxu1 %v2119_v23 }
  0x42   :  { %1940 = vmatmul.mubr.msk.f32.vlgmr.msra.gmra.mrb[0].mxu0 %vm93_vm0, %v65_v13  ;;  %p2481_p13 = por %p2480_p12, %p2479_p11 }
  0x43   :  { %1942 = vmatprep.mubr.msk.f32.mxu0 %vm93_vm0, %v66_v14 }
  0x44   :  { %2122 = vmatpush3.bf16.msra.mxu1 %v2119_v23  ;;  %p2482_p0 = pnand %p2481_p13, %p2475_p10 }
  0x46   :  { %1943 = vmatmul.mubr.msk.f32.gmra.mrb[2].mxu0 %vm93_vm0, %v67_v17 }
  0x47   :  { %1954 = vmatmul.mubr.msk.f32.vlgmr.msra.gmra.mrb[0].mxu1 %vm93_vm0, %v2595_v9 }
  0x48   :  { %1956 = vmatprep.mubr.msk.f32.mxu1 %vm93_vm0, %v2597_v11 }
  0x4b   :  { %1957 = vmatmul.mubr.msk.f32.gmra.mrb[2].mxu1 %vm93_vm0, %v2601_v15 }
 0x115   :  { %v1941_v29 = vpop.f32.mrb[0].mxu0 }
 0x116   :  { %v2620_v30 = vadd.f32 %v1941_v29, %v92_v28  ;;  %v172_v31 = vpop.f32.mrb[1].mxu0 }
 0x117   :  { %v173_v32 = vadd.f32 %v172_v31, %v92_v28 }
 0x119   :  { %v1944_v33 = vpop.f32.mrb[2].mxu0  ;;  %1967 = vmatprep.mubr.msk.f32.mxu0 %vm320_vm1, %v173_v32  ;;  %v2267_v34 = vpack.i.bf16 %v2620_v30, %v173_v32 }
 0x11a   :  { %v2624_v35 = vadd.f32 %v1944_v33, %v92_v28  ;;  %v182_v36 = vpop.f32.mrb[3].mxu0  ;;  %v1955_v2 = vpop.f32.mrb[0].mxu1 }
 0x11b   :  { %v2626_v37 = vadd.f32 %v182_v36, %v92_v28  ;;  %2268 = vrot.lane.b32.xlu1 %v2267_v34, %s2509_s2  ;;  %2258 = vrot.lane.b32.xlu0 %v2267_v34, %s2510_s23  ;;  %v269_v4 = vpop.f32.mrb[1].mxu1 }
 0x11c   :  { %v2666_v6 = vpack.i.bf16 %v1955_v2, %v269_v4 }
 0x11d   :  { %v2262_v38 = vpack.i.bf16 %v2624_v35, %v2626_v37 }
 0x11e   :  { %v1958_v8 = vpop.f32.mrb[2].mxu1 }
 0x11f   :  { %2273 = vrot.lane.b32.xlu1 %v2267_v34, %s2511_s26  ;;  %2263 = vrot.lane.b32.xlu0 %v2262_v38, %s2510_s23  ;;  %v279_v12 = vpop.f32.mrb[3].mxu1 }
 0x120   :  { %v2703_v33 = vpack.i.bf16 %v1958_v8, %v279_v12 }
 0x123   :  { %468 = vrot.lane.b32.xlu1 %v2620_v30, %s2512_s27  ;;  %466 = vrot.lane.b32.xlu0 %v173_v32, %s2512_s27 }
 0x127   :  { %2283 = vrot.lane.b32.xlu1 %v2262_v38, %s2511_s26  ;;  %2278 = vrot.lane.b32.xlu0 %v2262_v38, %s2509_s2 }
 0x12b   :  { %472 = vrot.lane.b32.xlu1 %v2624_v35, %s2512_s27  ;;  %470 = vrot.lane.b32.xlu0 %v2626_v37, %s2512_s27 }
 0x12f   :  { %837 = vrot.lane.b32.xlu1 %v173_v32, %s2513_s28  ;;  %2288 = vrot.lane.b32.xlu0 %v2267_v34, %s2514_s29  ;;  %v2705_v34 = vpack.c.bf16 %v1958_v8, %v279_v12 }
 0x133   :  { %2293 = vrot.lane.b32.xlu1 %v2262_v38, %s2514_s29  ;;  %839 = vrot.lane.b32.xlu0 %v2620_v30, %s2513_s28 }
 0x137   :  { %843 = vrot.lane.b32.xlu1 %v2624_v35, %s2513_s28  ;;  %841 = vrot.lane.b32.xlu0 %v2626_v37, %s2513_s28 }
 0x13b   :  { %1113 = vrot.lane.b32.xlu1 %v2620_v30, %s2515_s30  ;;  %1111 = vrot.lane.b32.xlu0 %v173_v32, %s2515_s30  ;;  %v2701_v32 = vpack.c.bf16 %v1955_v2, %v269_v4 }
 0x13f   :  { %1117 = vrot.lane.b32.xlu1 %v2624_v35, %s2515_s30  ;;  %1115 = vrot.lane.b32.xlu0 %v2626_v37, %s2515_s30 }
 0x143   :  { %2298 = vrot.lane.b32.xlu1 %v2666_v6, %s2509_s2 }
 0x18d   :  { %v2269_v39 = vpop.permute.xlu1 %2268  ;;  %v2259_v40 = vpop.permute.xlu0 %2258 }
 0x18e   :  { %v2271_v41 = vunpack.i.h.bf16 %v2269_v39  ;;  %v2270_v42 = vunpack.i.l.bf16 %v2269_v39  ;;  %v2261_v43 = vunpack.i.h.bf16 %v2259_v40  ;;  %v2260_v44 = vunpack.i.l.bf16 %v2259_v40 }
 0x18f   :  { %v290_v39 = vadd.s32 8, %v2614_v25  ;;  %v294_v40 = vand.u32 127, %v89_v24 }
 0x190   :  { %v2123_v46 = vpack.c.bf16 %v2271_v41, %v2270_v42  ;;  %v2135_v47 = vpack.c.bf16 %v2261_v43, %v2260_v44  ;;  %v295_v43 = vand.u32 1, %v2614_v25  ;;  %v292_v44 = vadd.s32 24, %v2614_v25 }
 0x191   :  { %v2274_v48 = vpop.permute.xlu1 %2273  ;;  %v2264_v49 = vpop.permute.xlu0 %2263  ;;  %v296_v41 = vand.u32 1, %v290_v39  ;;  %v299_v42 = vand.u32 1, %v294_v40 }
 0x192   :  { %v2266_v50 = vunpack.i.h.bf16 %v2264_v49  ;;  %v2265_v51 = vunpack.i.l.bf16 %v2264_v49  ;;  %2125 = vmatprep.subr.msk.bf16.mxu0 %vm2643_vm2, %v2123_v46  ;;  %2137 = vmatprep.subr.msk.bf16.mxu1 %vm2643_vm2, %v2135_v47  ;;  %v2276_v55 = vunpack.i.h.bf16 %v2274_v48  ;;  %v2275_v56 = vunpack.i.l.bf16 %v2274_v48 }
 0x193   :  { %2128 = vmatpush3.bf16.xpose.msk.msra.mxu0 %vm2643_vm2, %v2123_v46  ;;  %2140 = vmatpush3.bf16.xpose.msk.msra.mxu1 %vm2643_vm2, %v2135_v47  ;;  %vm301_vm3 = vcmp.eq.s32.totalorder %v296_v41, %v299_v42  ;;  %v291_v47 = vadd.s32 16, %v2614_v25  ;;  %vm300_vm4 = vcmp.eq.s32.totalorder %v295_v43, %v299_v42 }
 0x194   :  { %v2141_v52 = vpack.c.bf16 %v2266_v50, %v2265_v51  ;;  %v2163_v59 = vpack.c.bf16 %v2276_v55, %v2275_v56  ;;  %v305_v46 = vsel %vm301_vm3, 0.0, %v2516_v45  ;;  %v298_v51 = vand.u32 1, %v292_v44 }
 0x195   :  { %v469_v53 = vpop.permute.xlu1 %468  ;;  %v467_v54 = vpop.permute.xlu0 %466 }
 0x196   :  { %2143 = vmatprep.subr.msk.bf16.mxu1 %vm2643_vm2, %v2141_v52  ;;  %1981 = vmatprep.mubr.msk.f32.mxu1 %vm320_vm1, %v467_v54  ;;  %vm303_vm5 = vcmp.eq.s32.totalorder %v298_v51, %v299_v42 }
 0x199   :  { %v2284_v57 = vpop.permute.xlu1 %2283  ;;  %v2279_v58 = vpop.permute.xlu0 %2278 }
 0x19a   :  { %v2281_v60 = vunpack.i.h.bf16 %v2279_v58  ;;  %v2280_v61 = vunpack.i.l.bf16 %v2279_v58  ;;  %v2286_v0 = vunpack.i.h.bf16 %v2284_v57  ;;  %v2285_v1 = vunpack.i.l.bf16 %v2284_v57 }
 0x19b   :  { %2146 = vmatpush3.bf16.xpose.msk.msra.mxu1 %vm2643_vm2, %v2141_v52  ;;  %v297_v52 = vand.u32 1, %v291_v47 }
 0x19c   :  { %v2129_v62 = vpack.c.bf16 %v2281_v60, %v2280_v61  ;;  %2165 = vmatprep.subr.msk.bf16.mxu1 %vm2643_vm2, %v2163_v59  ;;  %v2169_v7 = vpack.c.bf16 %v2286_v0, %v2285_v1 }
 0x19d   :  { %v471_v63 = vpop.permute.xlu0 %470  ;;  %v473_v3 = vpop.permute.xlu1 %472  ;;  %vm302_vm6 = vcmp.eq.s32.totalorder %v297_v52, %v299_v42 }
 0x19e   :  { %2131 = vmatprep.subr.msk.bf16.mxu0 %vm2643_vm2, %v2129_v62  ;;  %v306_v1 = vsel %vm302_vm6, 0.0, %v2516_v45 }
 0x19f   :  { %2134 = vmatpush3.bf16.xpose.msk.msra.mxu0 %vm2643_vm2, %v2129_v62  ;;  %v307_v62 = vsel %vm303_vm5, 0.0, %v2516_v45 }
 0x1a1   :  { %v2289_v10 = vpop.permute.xlu0 %2288  ;;  %v838_v13 = vpop.permute.xlu1 %837 }
 0x1a2   :  { %1982 = vmatmul.mubr.msk.f32.vlgmr.msra.gmra.mrb[4].mxu1 %vm320_vm1, %v469_v53  ;;  %v2291_v14 = vunpack.i.h.bf16 %v2289_v10  ;;  %v2290_v16 = vunpack.i.l.bf16 %v2289_v10  ;;  %v304_v53 = vsel %vm300_vm4, 0.0, %v2516_v45 }
 0x1a3   :  { %1984 = vmatprep.mubr.msk.f32.mxu1 %vm320_vm1, %v471_v63  ;;  %2168 = vmatpush3.bf16.xpose.msk.msra.mxu1 %vm2643_vm2, %v2163_v59 }
 0x1a4   :  { %2171 = vmatprep.subr.msk.bf16.mxu1 %vm2643_vm2, %v2169_v7  ;;  %v2183_v17 = vpack.c.bf16 %v2291_v14, %v2290_v16 }
 0x1a5   :  { %v840_v18 = vpop.permute.xlu0 %839  ;;  %v2294_v19 = vpop.permute.xlu1 %2293 }
 0x1a6   :  { %1968 = vmatmul.mubr.msk.f32.vlgmr.msra.gmra.mrb[4].mxu0 %vm320_vm1, %v2620_v30  ;;  %1985 = vmatmul.mubr.msk.f32.gmra.mrb[6].mxu1 %vm320_vm1, %v473_v3  ;;  %v2296_v20 = vunpack.i.h.bf16 %v2294_v19  ;;  %v2295_v21 = vunpack.i.l.bf16 %v2294_v19 }
 0x1a7   :  { %1970 = vmatprep.mubr.msk.f32.mxu0 %vm320_vm1, %v2626_v37  ;;  %2023 = vmatprep.mubr.msk.f32.mxu1 %vm320_vm1, %v838_v13 }
 0x1a8   :  { %v2189_v23 = vpack.c.bf16 %v2296_v20, %v2295_v21 }
 0x1a9   :  { %v842_v22 = vpop.permute.xlu0 %841  ;;  %v844_v26 = vpop.permute.xlu1 %843 }
 0x1aa   :  { %1971 = vmatmul.mubr.msk.f32.gmra.mrb[6].mxu0 %vm320_vm1, %v2624_v35 }
 0x1ab   :  { %2174 = vmatpush3.bf16.xpose.msk.msra.mxu1 %vm2643_vm2, %v2169_v7 }
 0x1ac   :  { %2185 = vmatprep.subr.msk.bf16.mxu1 %vm2643_vm2, %v2183_v17 }
 0x1ad   :  { %v1112_v28 = vpop.permute.xlu0 %1111  ;;  %v1114_v29 = vpop.permute.xlu1 %1113 }
 0x1b1   :  { %v1116_v30 = vpop.permute.xlu0 %1115  ;;  %v1118_v31 = vpop.permute.xlu1 %1117 }
 0x1b2   :  { %2024 = vmatmul.mubr.msk.f32.vlgmr.msra.gmra.mrb[8].mxu1 %vm320_vm1, %v840_v18 }
 0x1b3   :  { %2026 = vmatprep.mubr.msk.f32.mxu1 %vm320_vm1, %v842_v22  ;;  %2188 = vmatpush3.bf16.xpose.msk.msra.mxu1 %vm2643_vm2, %v2183_v17 }
 0x1b4   :  { %2191 = vmatprep.subr.msk.bf16.mxu1 %vm2643_vm2, %v2189_v23 }
 0x1b5   :  { %v2299_v35 = vpop.permute.xlu1 %2298 }
 0x1b6   :  { %2027 = vmatmul.mubr.msk.f32.gmra.mrb[10].mxu1 %vm320_vm1, %v844_v26  ;;  %v2301_v36 = vunpack.i.h.bf16 %v2299_v35  ;;  %v2300_v37 = vunpack.i.l.bf16 %v2299_v35 }
 0x1b7   :  { %2051 = vmatprep.mubr.msk.f32.mxu1 %vm320_vm1, %v1112_v28 }
 0x1b8   :  { %v2147_v38 = vpack.c.bf16 %v2301_v36, %v2300_v37 }
 0x1ba   :  { %2148 = vmatprep.subr.bf16.mxu0 %v2147_v38 }
 0x1bb   :  { %2194 = vmatpush3.bf16.xpose.msk.msra.mxu1 %vm2643_vm2, %v2189_v23  ;;  %2150 = vmatpush3.bf16.msra.mxu0 %v2147_v38 }
 0x1c2   :  { %2052 = vmatmul.mubr.msk.f32.vlgmr.msra.gmra.mrb[12].mxu1 %vm320_vm1, %v1114_v29 }
 0x1c3   :  { %2054 = vmatprep.mubr.msk.f32.mxu1 %vm320_vm1, %v1116_v30 }
 0x1c6   :  { %2055 = vmatmul.mubr.msk.f32.gmra.mrb[14].mxu1 %vm320_vm1, %v1118_v31 }
 0x275   :  { %v1983_v48 = vpop.f32.mrb[4].mxu1 }
 0x276   :  { %v2712_v49 = vadd.f32 %v1983_v48, %v305_v46  ;;  %v564_v50 = vpop.f32.mrb[5].mxu1 }
 0x277   :  { %v2720_v60 = vadd.f32 %v564_v50, %v304_v53 }
 0x278   :  { %v586_v24 = vsel %vm93_vm0, %v2712_v49, -inf }
 0x279   :  { %587 = vmax.xlane.f32.xlu1 %v586_v24  ;;  %v1969_v54 = vpop.f32.mrb[4].mxu0  ;;  %v1986_v55 = vpop.f32.mrb[6].mxu1  ;;  %v583_v7 = vsel %vm93_vm0, %v2720_v60, -inf }
 0x27a   :  { %v2716_v56 = vadd.f32 %v1969_v54, %v305_v46  ;;  %v403_v57 = vpop.f32.mrb[5].mxu0  ;;  %v574_v58 = vpop.f32.mrb[7].mxu1  ;;  %v2728_v4 = vadd.f32 %v1986_v55, %v307_v62 }
 0x27b   :  { %v2718_v59 = vadd.f32 %v403_v57, %v304_v53  ;;  %v2740_v17 = vadd.f32 %v574_v58, %v306_v1 }
 0x27c   :  { %v425_v61 = vsel %vm93_vm0, %v2716_v56, -inf  ;;  %v592_v12 = vsel %vm93_vm0, %v2728_v4, -inf }
 0x27d   :  { %426 = vmax.xlane.f32.xlu0 %v425_v61  ;;  %v1972_v63 = vpop.f32.mrb[6].mxu0  ;;  %v422_v0 = vsel %vm93_vm0, %v2718_v59, -inf  ;;  %v589_v26 = vsel %vm93_vm0, %v2740_v17, -inf }
 0x27e   :  { %v413_v2 = vpop.f32.mrb[7].mxu0  ;;  %423 = vmax.xlane.f32.xlu1 %v422_v0  ;;  %v2734_v10 = vadd.f32 %v1972_v63, %v307_v62 }
 0x27f   :  { %v2726_v3 = vadd.f32 %v413_v2, %v306_v1 }
 0x280   :  { %v431_v18 = vsel %vm93_vm0, %v2734_v10, -inf }
 0x281   :  { %584 = vmax.xlane.f32.xlu0 %v583_v7  ;;  %v428_v8 = vsel %vm93_vm0, %v2726_v3, -inf }
 0x282   :  { %429 = vmax.xlane.f32.xlu1 %v428_v8 }
 0x285   :  { %v2025_v13 = vpop.f32.mrb[8].mxu1  ;;  %593 = vmax.xlane.f32.xlu0 %v592_v12 }
 0x286   :  { %v935_v14 = vpop.f32.mrb[9].mxu1  ;;  %v2748_v23 = vadd.f32 %v2025_v13, %v305_v46 }
 0x287   :  { %v2738_v16 = vadd.f32 %v935_v14, %v304_v53 }
 0x288   :  { %v957_v30 = vsel %vm93_vm0, %v2748_v23, -inf }
 0x289   :  { %v2028_v19 = vpop.f32.mrb[10].mxu1  ;;  %432 = vmax.xlane.f32.xlu0 %v431_v18  ;;  %v954_v20 = vsel %vm93_vm0, %v2738_v16, -inf }
 0x28a   :  { %v945_v21 = vpop.f32.mrb[11].mxu1  ;;  %955 = vmax.xlane.f32.xlu1 %v954_v20  ;;  %v2754_v29 = vadd.f32 %v2028_v19, %v307_v62 }
 0x28b   :  { %v2746_v22 = vadd.f32 %v945_v21, %v306_v1 }
 0x28c   :  { %v963_v31 = vsel %vm93_vm0, %v2754_v29, -inf }
 0x28d   :  { %590 = vmax.xlane.f32.xlu0 %v589_v26  ;;  %v960_v28 = vsel %vm93_vm0, %v2746_v22, -inf }
 0x28e   :  { %961 = vmax.xlane.f32.xlu1 %v960_v28 }
 0x291   :  { %958 = vmax.xlane.f32.xlu0 %v957_v30 }
 0x295   :  { %v2053_v35 = vpop.f32.mrb[12].mxu1  ;;  %964 = vmax.xlane.f32.xlu0 %v963_v31 }
 0x296   :  { %v2760_v36 = vadd.f32 %v2053_v35, %v305_v46  ;;  %v1209_v37 = vpop.f32.mrb[13].mxu1 }
 0x297   :  { %v2762_v38 = vadd.f32 %v1209_v37, %v304_v53 }
 0x298   :  { %v1231_v39 = vsel %vm93_vm0, %v2760_v36, -inf }
 0x299   :  { %v2056_v40 = vpop.f32.mrb[14].mxu1  ;;  %1232 = vmax.xlane.f32.xlu0 %v1231_v39  ;;  %v1228_v41 = vsel %vm93_vm0, %v2762_v38, -inf }
 0x29a   :  { %v2768_v42 = vadd.f32 %v2056_v40, %v307_v62  ;;  %v1219_v43 = vpop.f32.mrb[15].mxu1  ;;  %1229 = vmax.xlane.f32.xlu1 %v1228_v41 }
 0x29b   :  { %v2770_v44 = vadd.f32 %v1219_v43, %v306_v1 }
 0x29c   :  { %v1237_v45 = vsel %vm93_vm0, %v2768_v42, -inf }
 0x29d   :  { %1238 = vmax.xlane.f32.xlu0 %v1237_v45  ;;  %v1234_v46 = vsel %vm93_vm0, %v2770_v44, -inf }
 0x2ab   :  { %2308 = vrot.lane.b32.xlu1 %v2666_v6, %s2517_s4 }
 0x2b3   :  { %2303 = vrot.lane.b32.xlu0 %v2703_v33, %s2509_s2 }
 0x2cf   :  { %1235 = vmax.xlane.f32.xlu1 %v1234_v46 }
 0x306   :  { %v588_v47 = vpop.xlane.xlu1 %587 }
 0x307   :  { %v596_v48 = vsub.f32 %v2712_v49, %v588_v47 }
 0x309   :  { %v601_v50 = vmul.f32 1.442695, %v596_v48 }
 0x30a   :  { %v427_v51 = vpop.xlane.xlu0 %426 }
 0x30b   :  { %2327 = vpow2.f32 %v601_v50  ;;  %v435_v52 = vsub.f32 %v2716_v56, %v427_v51  ;;  %v424_v24 = vpop.xlane.xlu1 %423 }
 0x30c   :  { %v434_v54 = vsub.f32 %v2718_v59, %v424_v24 }
 0x30d   :  { %v440_v53 = vmul.f32 1.442695, %v435_v52 }
 0x30e   :  { %v585_v55 = vpop.xlane.xlu0 %584  ;;  %v438_v58 = vmul.f32 1.442695, %v434_v54 }
 0x30f   :  { %2329 = vpow2.f32 %v440_v53  ;;  %v595_v57 = vsub.f32 %v2720_v60, %v585_v55  ;;  %v430_v49 = vpop.xlane.xlu1 %429 }
 0x310   :  { %v436_v8 = vsub.f32 %v2726_v3, %v430_v49 }
 0x311   :  { %v599_v61 = vmul.f32 1.442695, %v595_v57 }
 0x312   :  { %v594_v62 = vpop.xlane.xlu0 %593  ;;  %v442_v19 = vmul.f32 1.442695, %v436_v8 }
 0x313   :  { %2331 = vpow2.f32 %v599_v61  ;;  %v598_v63 = vsub.f32 %v2728_v4, %v594_v62 }
 0x314   :  { %2333 = vpow2.f32 %v438_v58 }
 0x315   :  { %v2785_v0 = vpop.eup %2327  ;;  %v605_v1 = vmul.f32 1.442695, %v598_v63 }
 0x316   :  { %v433_v56 = vpop.xlane.xlu0 %432  ;;  %v610_v2 = vsel %vm93_vm0, %v2785_v0, 0.0 }
 0x317   :  { %2335 = vpow2.f32 %v605_v1  ;;  %v437_v59 = vsub.f32 %v2734_v10, %v433_v56  ;;  %611 = vadd.xlane.f32.xlu0 %v610_v2  ;;  %v956_v60 = vpop.xlane.xlu1 %955 }
 0x318   :  { %v966_v10 = vsub.f32 %v2738_v16, %v956_v60 }
 0x319   :  { %v2790_v7 = vpop.eup %2329  ;;  %v444_v12 = vmul.f32 1.442695, %v437_v59 }
 0x31a   :  { %v591_v4 = vpop.xlane.xlu0 %590  ;;  %v449_v13 = vsel %vm93_vm0, %v2790_v7, 0.0  ;;  %v970_v37 = vmul.f32 1.442695, %v966_v10 }
 0x31b   :  { %2337 = vpow2.f32 %v444_v12  ;;  %v597_v14 = vsub.f32 %v2740_v17, %v591_v4  ;;  %450 = vadd.xlane.f32.xlu0 %v449_v13  ;;  %v962_v21 = vpop.xlane.xlu1 %961 }
 0x31c   :  { %v968_v17 = vsub.f32 %v2746_v22, %v962_v21 }
 0x31d   :  { %v2796_v18 = vpop.eup %2331  ;;  %v603_v20 = vmul.f32 1.442695, %v597_v14 }
 0x31e   :  { %v959_v26 = vpop.xlane.xlu0 %958  ;;  %v607_v3 = vsel %vm93_vm0, %v2796_v18, 0.0  ;;  %v2801_v28 = vpop.eup %2333  ;;  %v974_v43 = vmul.f32 1.442695, %v968_v17 }
 0x31f   :  { %2339 = vpow2.f32 %v603_v20  ;;  %v967_v30 = vsub.f32 %v2748_v23, %v959_v26  ;;  %608 = vadd.xlane.f32.xlu1 %v607_v3  ;;  %v446_v40 = vsel %vm93_vm0, %v2801_v28, 0.0 }
 0x320   :  { %2341 = vpow2.f32 %v442_v19 }
 0x321   :  { %v2804_v31 = vpop.eup %2335  ;;  %v972_v35 = vmul.f32 1.442695, %v967_v30 }
 0x322   :  { %v965_v39 = vpop.xlane.xlu0 %964  ;;  %v616_v16 = vsel %vm93_vm0, %v2804_v31, 0.0 }
 0x323   :  { %2343 = vpow2.f32 %v972_v35  ;;  %v969_v41 = vsub.f32 %v2754_v29, %v965_v39  ;;  %617 = vadd.xlane.f32.xlu0 %v616_v16  ;;  %447 = vadd.xlane.f32.xlu1 %v446_v40 }
 0x324   :  { %2345 = vpow2.f32 %v970_v37 }
 0x325   :  { %v2812_v23 = vpop.eup %2337  ;;  %v976_v45 = vmul.f32 1.442695, %v969_v41 }
 0x326   :  { %v1233_v22 = vpop.xlane.xlu0 %1232  ;;  %v455_v46 = vsel %vm93_vm0, %v2812_v23, 0.0 }
 0x327   :  { %2347 = vpow2.f32 %v976_v45  ;;  %v1241_v47 = vsub.f32 %v2760_v36, %v1233_v22  ;;  %456 = vadd.xlane.f32.xlu0 %v455_v46  ;;  %v1230_v60 = vpop.xlane.xlu1 %1229 }
 0x328   :  { %2349 = vpow2.f32 %v974_v43  ;;  %v1240_v8 = vsub.f32 %v2762_v38, %v1230_v60 }
 0x329   :  { %v2817_v48 = vpop.eup %2339  ;;  %v1246_v50 = vmul.f32 1.442695, %v1241_v47 }
 0x32a   :  { %v1239_v29 = vpop.xlane.xlu0 %1238  ;;  %v613_v51 = vsel %vm93_vm0, %v2817_v48, 0.0  ;;  %v2821_v52 = vpop.eup %2341  ;;  %v1244_v12 = vmul.f32 1.442695, %v1240_v8 }
 0x32b   :  { %614 = vadd.xlane.f32.xlu1 %v613_v51  ;;  %2351 = vpow2.f32 %v1246_v50  ;;  %v452_v36 = vsel %vm93_vm0, %v2821_v52, 0.0  ;;  %v1243_v4 = vsub.f32 %v2768_v42, %v1239_v29  ;;  %v2309_v13 = vpop.permute.xlu1 %2308 }
 0x32c   :  { %2353 = vpow2.f32 %v1244_v12  ;;  %v2310_v22 = vunpack.i.l.bf16 %v2309_v13 }
 0x32d   :  { %v2823_v24 = vpop.eup %2343  ;;  %v1250_v14 = vmul.f32 1.442695, %v1243_v4 }
 0x32e   :  { %v2304_v53 = vpop.permute.xlu0 %2303  ;;  %v981_v54 = vsel %vm93_vm0, %v2823_v24, 0.0  ;;  %v2829_v58 = vpop.eup %2345 }
 0x32f   :  { %v2306_v55 = vunpack.i.h.bf16 %v2304_v53  ;;  %v2305_v57 = vunpack.i.l.bf16 %v2304_v53  ;;  %982 = vadd.xlane.f32.xlu0 %v981_v54  ;;  %453 = vadd.xlane.f32.xlu1 %v452_v36  ;;  %v978_v1 = vsel %vm93_vm0, %v2829_v58, 0.0  ;;  %2355 = vpow2.f32 %v1250_v14 }
 0x331   :  { %v2831_v61 = vpop.eup %2347  ;;  %v2151_v62 = vpack.c.bf16 %v2306_v55, %v2305_v57 }
 0x332   :  { %v987_v63 = vsel %vm93_vm0, %v2831_v61, 0.0  ;;  %v2835_v49 = vpop.eup %2349 }
 0x333   :  { %988 = vadd.xlane.f32.xlu0 %v987_v63  ;;  %2152 = vmatprep.subr.bf16.mxu0 %v2151_v62  ;;  %v984_v56 = vsel %vm93_vm0, %v2835_v49, 0.0 }
 0x334   :  { %979 = vadd.xlane.f32.xlu1 %v978_v1  ;;  %2154 = vmatpush3.bf16.msra.mxu0 %v2151_v62 }
 0x335   :  { %2156 = vmatprep.subr.bf16.mxu0 %v2701_v32  ;;  %v2842_v2 = vpop.eup %2351 }
 0x336   :  { %v1255_v59 = vsel %vm93_vm0, %v2842_v2, 0.0  ;;  %v2852_v21 = vpop.eup %2353 }
 0x337   :  { %985 = vadd.xlane.f32.xlu0 %v984_v56 }
 0x339   :  { %v2856_v26 = vpop.eup %2355 }
 0x33a   :  { %v1261_v38 = vsel %vm93_vm0, %v2856_v26, 0.0 }
 0x33b   :  { %1256 = vadd.xlane.f32.xlu0 %v1255_v59 }
 0x345   :  { %2318 = vrot.lane.b32.xlu1 %v2666_v6, %s2518_s5  ;;  %v1252_v6 = vsel %vm93_vm0, %v2852_v21, 0.0 }
 0x351   :  { %2313 = vrot.lane.b32.xlu0 %v2703_v33, %s2517_s4 }
 0x35c   :  { %v1236_v19 = vpop.xlane.xlu1 %1235 }
 0x35d   :  { %v1242_v20 = vsub.f32 %v2770_v44, %v1236_v19 }
 0x35f   :  { %v1248_v10 = vmul.f32 1.442695, %v1242_v20 }
 0x361   :  { %2357 = vpow2.f32 %v1248_v10 }
 0x369   :  { %1253 = vadd.xlane.f32.xlu1 %v1252_v6 }
 0x36b   :  { %v2860_v42 = vpop.eup %2357 }
 0x36c   :  { %v1258_v44 = vsel %vm93_vm0, %v2860_v42, 0.0 }
 0x36d   :  { %1262 = vadd.xlane.f32.xlu1 %v1261_v38 }
 0x371   :  { %1259 = vadd.xlane.f32.xlu1 %v1258_v44 }
 0x382   :  { %2323 = vrot.lane.b32.xlu1 %v2703_v33, %s2518_s5  ;;  %v2311_v33 = vunpack.i.h.bf16 %v2309_v13 }
 0x384   :  { %v2175_v50 = vpack.c.bf16 %v2311_v33, %v2310_v22 }
 0x3a4   :  { %v612_v3 = vpop.xlane.xlu0 %611 }
 0x3a5   :  { %2359 = vrcp.f32 %v612_v3 }
 0x3a8   :  { %v451_v17 = vpop.xlane.xlu0 %450 }
 0x3ac   :  { %v609_v30 = vpop.xlane.xlu1 %608 }
 0x3ad   :  { %2361 = vrcp.f32 %v609_v30 }
 0x3af   :  { %v2360_v39 = vpop.eup %2359 }
 0x3b0   :  { %v618_v35 = vpop.xlane.xlu0 %617  ;;  %v448_v37 = vpop.xlane.xlu1 %447  ;;  %v624_v45 = vmul.f32 %v2360_v39, %v2785_v0 }
 0x3b1   :  { %2363 = vrcp.f32 %v618_v35 }
 0x3b2   :  { %2365 = vrcp.f32 %v448_v37 }
 0x3b4   :  { %v457_v40 = vpop.xlane.xlu0 %456 }
 0x3b7   :  { %v2362_v16 = vpop.eup %2361 }
 0x3b8   :  { %v615_v41 = vpop.xlane.xlu1 %614  ;;  %v623_v43 = vmul.f32 %v2362_v16, %v2796_v18 }
 0x3b9   :  { %2367 = vrcp.f32 %v615_v41  ;;  %v1387_v41 = vsub.s32 1, %v2614_v25 }
 0x3ba   :  { %1995 = vmatprep.mubr.msk.f32.mxu0 %vm93_vm0, %v623_v43  ;;  %2369 = vrcp.f32 %v451_v17 }
 0x3bb   :  { %1996 = vmatmul.mubr.msk.f32.vlgmr.msra.gmra.mrb[8].mxu0 %vm93_vm0, %v624_v45  ;;  %v2364_v18 = vpop.eup %2363  ;;  %v1388_v43 = vrot.slane %v2617_v27, %v1387_v41  ;;  %v1452_v41 = vsub.s32 4, %v2614_v25 }
 0x3bc   :  { %2158 = vmatpush3.bf16.msra.mxu0 %v2701_v32  ;;  %v983_v46 = vpop.xlane.xlu0 %982  ;;  %v454_v47 = vpop.xlane.xlu1 %453  ;;  %v626_v32 = vmul.f32 %v2364_v18, %v2804_v31 }
 0x3bd   :  { %2160 = vmatprep.subr.bf16.mxu0 %v2705_v34  ;;  %2371 = vrcp.f32 %v454_v47  ;;  %v2366_v51 = vpop.eup %2365 }
 0x3be   :  { %2373 = vrcp.f32 %v457_v40  ;;  %v462_v57 = vmul.f32 %v2366_v51, %v2801_v28 }
 0x3c0   :  { %2162 = vmatpush3.bf16.msra.mxu0 %v2705_v34  ;;  %v989_v0 = vpop.xlane.xlu0 %988 }
 0x3c1   :  { %v980_v29 = vpop.xlane.xlu1 %979  ;;  %2176 = vmatprep.subr.bf16.mxu0 %v2175_v50 }
 0x3c2   :  { %2375 = vrcp.f32 %v980_v29 }
 0x3c3   :  { %v2368_v53 = vpop.eup %2367  ;;  %2377 = vrcp.f32 %v983_v46 }
 0x3c4   :  { %v986_v54 = vpop.xlane.xlu0 %985  ;;  %v625_v36 = vmul.f32 %v2368_v53, %v2817_v48  ;;  %v2370_v55 = vpop.eup %2369 }
 0x3c5   :  { %2379 = vrcp.f32 %v986_v54  ;;  %v463_v1 = vmul.f32 %v2370_v55, %v2790_v7  ;;  %v2319_v48 = vpop.permute.xlu1 %2318 }
 0x3c6   :  { %1998 = vmatprep.mubr.msk.f32.mxu0 %vm93_vm0, %v625_v36  ;;  %2381 = vrcp.f32 %v989_v0  ;;  %v2321_v60 = vunpack.i.h.bf16 %v2319_v48  ;;  %v2320_v8 = vunpack.i.l.bf16 %v2319_v48 }
 0x3c7   :  { %1999 = vmatmul.mubr.msk.f32.gmra.mrb[10].mxu0 %vm93_vm0, %v626_v32  ;;  %v2372_v34 = vpop.eup %2371 }
 0x3c8   :  { %v1257_v62 = vpop.xlane.xlu0 %1256  ;;  %2009 = vmatprep.mubr.msk.f32.mxu0 %vm93_vm0, %v462_v57  ;;  %v2374_v63 = vpop.eup %2373  ;;  %v464_v31 = vmul.f32 %v2372_v34, %v2821_v52  ;;  %v2195_v19 = vpack.c.bf16 %v2321_v60, %v2320_v8 }
 0x3c9   :  { %v465_v28 = vmul.f32 %v2374_v63, %v2812_v23 }
 0x3cb   :  { %2010 = vmatmul.mubr.msk.f32.vlgmr.msra.gmra.mrb[8].mxu0 %vm93_vm0, %v463_v1 }
 0x3cc   :  { %v2376_v56 = vpop.eup %2375  ;;  %2178 = vmatpush3.bf16.msra.mxu0 %v2175_v50  ;;  %v2314_v59 = vpop.permute.xlu0 %2313  ;;  %2012 = vmatprep.mubr.msk.f32.mxu0 %vm93_vm0, %v464_v31 }
 0x3cd   :  { %v2316_v12 = vunpack.i.h.bf16 %v2314_v59  ;;  %v2315_v4 = vunpack.i.l.bf16 %v2314_v59  ;;  %v994_v13 = vmul.f32 %v2376_v56, %v2829_v58  ;;  %v2378_v14 = vpop.eup %2377 }
 0x3ce   :  { %v995_v20 = vmul.f32 %v2378_v14, %v2823_v24  ;;  %v78_v14 = vld [vmem:[#allocation7 + $0x98] sm:$0xff] }
 0x3cf   :  { %v2179_v7 = vpack.c.bf16 %v2316_v12, %v2315_v4  ;;  %2013 = vmatmul.mubr.msk.f32.gmra.mrb[10].mxu0 %vm93_vm0, %v465_v28  ;;  %v2380_v52 = vpop.eup %2379  ;;  %v76_v4 = vld [vmem:[#allocation7 + $0x68] sm:$0xff] }
 0x3d0   :  { %2037 = vmatprep.mubr.msk.f32.mxu0 %vm93_vm0, %v994_v13  ;;  %v2382_v23 = vpop.eup %2381  ;;  %v996_v10 = vmul.f32 %v2380_v52, %v2835_v49  ;;  %v77_v13 = vld [vmem:[#allocation7 + $0x80] sm:$0xff]  ;;  %v79_v52 = vld [vmem:[#allocation7 + $0xb0] sm:$0xff] }
 0x3d1   :  { %2180 = vmatprep.subr.bf16.mxu0 %v2179_v7  ;;  %v997_v58 = vmul.f32 %v2382_v23, %v2831_v61  ;;  %v81_v23 = vld [vmem:[#allocation7 + $0x28] sm:$0xff] }
 0x3d2   :  { %2182 = vmatpush3.bf16.msra.mxu0 %v2179_v7  ;;  %v2203_v7 = vpack.c.bf16 %v77_v13, %v76_v4 }
 0x3d3   :  { %2196 = vmatprep.subr.bf16.mxu0 %v2195_v19 }
 0x3d5   :  { %2038 = vmatmul.mubr.msk.f32.vlgmr.msra.gmra.mrb[8].mxu0 %vm93_vm0, %v995_v20  ;;  %v80_v20 = vld [vmem:[#allocation7 + $0x10] sm:$0xff] }
 0x3d6   :  { %2040 = vmatprep.mubr.msk.f32.mxu0 %vm93_vm0, %v996_v10  ;;  %2198 = vmatpush3.bf16.msra.mxu0 %v2195_v19  ;;  %v2207_v19 = vpack.c.bf16 %v79_v52, %v78_v14  ;;  %v82_v10 = vld [vmem:[#allocation7 + $0x40] sm:$0xff] }
 0x3d9   :  { %2041 = vmatmul.mubr.msk.f32.gmra.mrb[10].mxu0 %vm93_vm0, %v997_v58  ;;  %v2211_v58 = vpack.c.bf16 %v81_v23, %v80_v20 }
 0x3db   :  { %2212 = vmatprep.subr.bf16.mxu1 %v2211_v58 }
 0x3dc   :  { %2214 = vmatpush3.bf16.msra.mxu1 %v2211_v58 }
 0x3f6   :  { %v1254_v6 = vpop.xlane.xlu1 %1253 }
 0x3f7   :  { %2383 = vrcp.f32 %v1254_v6  ;;  %v83_v6 = vld [vmem:[#allocation7 + $0x58] sm:$0xff] }
 0x3f8   :  { %2385 = vrcp.f32 %v1257_v62 }
 0x3fa   :  { %v1263_v38 = vpop.xlane.xlu1 %1262 }
 0x3fe   :  { %v1260_v44 = vpop.xlane.xlu1 %1259 }
 0x3ff   :  { %2387 = vrcp.f32 %v1260_v44  ;;  %v84_v44 = vld [vmem:[#allocation7 + $0x70] sm:$0xff] }
 0x400   :  { %2389 = vrcp.f32 %v1263_v38  ;;  %v2215_v38 = vpack.c.bf16 %v83_v6, %v82_v10 }
 0x401   :  { %v2384_v24 = vpop.eup %2383 }
 0x402   :  { %v2324_v3 = vpop.permute.xlu1 %2323  ;;  %v1268_v49 = vmul.f32 %v2384_v24, %v2852_v21  ;;  %v2386_v37 = vpop.eup %2385  ;;  %v85_v24 = vld [vmem:[#allocation7 + $0x88] sm:$0xff]  ;;  %2216 = vmatprep.subr.bf16.mxu1 %v2215_v38 }
 0x403   :  { %v2326_v30 = vunpack.i.h.bf16 %v2324_v3  ;;  %v2325_v17 = vunpack.i.l.bf16 %v2324_v3  ;;  %v1269_v39 = vmul.f32 %v2386_v37, %v2842_v2  ;;  %v2219_v3 = vpack.c.bf16 %v85_v24, %v84_v44  ;;  %2218 = vmatpush3.bf16.msra.mxu1 %v2215_v38 }
 0x404   :  { %2065 = vmatprep.mubr.msk.f32.mxu0 %vm93_vm0, %v1268_v49 }
 0x405   :  { %v2199_v35 = vpack.c.bf16 %v2326_v30, %v2325_v17  ;;  %2220 = vmatprep.subr.bf16.mxu1 %v2219_v3 }
 0x407   :  { %2200 = vmatprep.subr.bf16.mxu0 %v2199_v35  ;;  %2222 = vmatpush3.bf16.msra.mxu1 %v2219_v3 }
 0x408   :  { %2202 = vmatpush3.bf16.msra.mxu0 %v2199_v35 }
 0x409   :  { %v2388_v61 = vpop.eup %2387  ;;  %2204 = vmatprep.subr.bf16.mxu0 %v2203_v7 }
 0x40a   :  { %v2390_v16 = vpop.eup %2389  ;;  %v1270_v40 = vmul.f32 %v2388_v61, %v2860_v42 }
 0x40b   :  { %2066 = vmatmul.mubr.msk.f32.vlgmr.msra.gmra.mrb[8].mxu0 %vm93_vm0, %v1269_v39  ;;  %v1271_v21 = vmul.f32 %v2390_v16, %v2856_v26 }
 0x40c   :  { %2068 = vmatprep.mubr.msk.f32.mxu0 %vm93_vm0, %v1270_v40  ;;  %2206 = vmatpush3.bf16.msra.mxu0 %v2203_v7  ;;  %v1573_v7 = vsub.s32 3, %v2614_v25 }
 0x40d   :  { %2208 = vmatprep.subr.bf16.mxu0 %v2207_v19 }
 0x40f   :  { %2069 = vmatmul.mubr.msk.f32.gmra.mrb[10].mxu0 %vm93_vm0, %v1271_v21 }
 0x410   :  { %2210 = vmatpush3.bf16.msra.mxu0 %v2207_v19 }
 0x4de   :  { %v2067_v45 = vpop.f32.mrb[8].mxu0 }
 0x4df   :  { %v1390_v33 = vadd.f32 %v2067_v45, %v1388_v43  ;;  %v1362_v22 = vpop.f32.mrb[9].mxu0 }
 0x4e0   :  { %v1389_v46 = vadd.f32 %v1388_v43, %v1362_v22  ;;  %v2932_v22 = vld [vmem:[#allocation7 + $0x60] sm:$0xff] }
 0x4e1   :  { %v1394_v2 = vadd.f32 %v1390_v33, %v2595_v9  ;;  %v1460_v33 = vsub.s32 5, %v2614_v25  ;;  %v1574_v14 = vrot.slane %v2932_v22, %v1573_v7 }
 0x4e2   :  { %v2070_v47 = vpop.f32.mrb[10].mxu0  ;;  %v1393_v42 = vadd.f32 %v1389_v46, %v2589_v5  ;;  %v1453_v46 = vrot.slane %v2932_v22, %v1452_v41 }
 0x4e3   :  { %v1372_v50 = vpop.f32.mrb[11].mxu0  ;;  %v1400_v0 = vsel %vm93_vm0, %v1394_v2, 0.0  ;;  %v1392_v18 = vadd.f32 %v2070_v47, %v1388_v43 }
 0x4e4   :  { %v1391_v26 = vadd.f32 %v1388_v43, %v1372_v50  ;;  %1401 = vadd.xlane.f32.xlu1 %v1400_v0  ;;  %v1397_v29 = vsel %vm93_vm0, %v1393_v42, 0.0  ;;  %v1461_v0 = vrot.slane %v2932_v22, %v1460_v33 }
 0x4e5   :  { %1398 = vadd.xlane.f32.xlu0 %v1397_v29  ;;  %v1396_v53 = vadd.f32 %v1392_v18, %v2601_v15 }
 0x4e6   :  { %v1395_v27 = vadd.f32 %v1391_v26, %v2597_v11 }
 0x4e7   :  { %v1406_v9 = vsel %vm93_vm0, %v1396_v53, 0.0 }
 0x4e8   :  { %v1403_v51 = vsel %vm93_vm0, %v1395_v27, 0.0 }
 0x4e9   :  { %1404 = vadd.xlane.f32.xlu0 %v1403_v51 }
 0x4ed   :  { %1407 = vadd.xlane.f32.xlu0 %v1406_v9 }
 0x571   :  { %v1402_v5 = vpop.xlane.xlu1 %1401 }
 0x572   :  { %v1411_v54 = vmul.f32 0.03125, %v1402_v5  ;;  %v1399_v36 = vpop.xlane.xlu0 %1398 }
 0x573   :  { %v1410_v32 = vmul.f32 0.03125, %v1399_v36 }
 0x574   :  { %v2910_v55 = vsub.f32 %v1394_v2, %v1411_v54 }
 0x575   :  { %v2912_v57 = vsub.f32 %v1393_v42, %v1410_v32 }
 0x576   :  { %v1405_v34 = vpop.xlane.xlu0 %1404  ;;  %v1419_v11 = vmul.f32 %v2910_v55, %v2910_v55 }
 0x577   :  { %v1412_v62 = vmul.f32 0.03125, %v1405_v34  ;;  %v1418_v15 = vmul.f32 %v2912_v57, %v2912_v57  ;;  %v87_v34 = vld [vmem:[#allocation7 + $0xb8] sm:$0xff] }
 0x578   :  { %v1425_v63 = vsel %vm93_vm0, %v1419_v11, 0.0 }
 0x579   :  { %v2919_v1 = vsub.f32 %v1395_v27, %v1412_v62  ;;  %1426 = vadd.xlane.f32.xlu0 %v1425_v63  ;;  %v1422_v48 = vsel %vm93_vm0, %v1418_v15, 0.0  ;;  %v1468_v62 = vsub.s32 2, %v2614_v25 }
 0x57a   :  { %1423 = vadd.xlane.f32.xlu1 %v1422_v48  ;;  %v1408_v31 = vpop.xlane.xlu0 %1407 }
 0x57b   :  { %v1413_v56 = vmul.f32 0.03125, %v1408_v31  ;;  %v1420_v59 = vmul.f32 %v2919_v1, %v2919_v1  ;;  %v1469_v15 = vrot.slane %v2932_v22, %v1468_v62  ;;  %v1731_v62 = vsub.s32 6, %v2614_v25 }
 0x57d   :  { %v2924_v28 = vsub.f32 %v1396_v53, %v1413_v56  ;;  %v1428_v60 = vsel %vm93_vm0, %v1420_v59, 0.0 }
 0x57e   :  { %1429 = vadd.xlane.f32.xlu1 %v1428_v60 }
 0x57f   :  { %v1421_v8 = vmul.f32 %v2924_v28, %v2924_v28 }
 0x581   :  { %v1431_v12 = vsel %vm93_vm0, %v1421_v8, 0.0 }
 0x582   :  { %1432 = vadd.xlane.f32.xlu0 %v1431_v12 }
 0x606   :  { %v1427_v49 = vpop.xlane.xlu0 %1426 }
 0x607   :  { %v1435_v30 = vmul.f32 0.03125, %v1427_v49  ;;  %v1424_v17 = vpop.xlane.xlu1 %1423 }
 0x608   :  { %v1434_v35 = vmul.f32 0.03125, %v1424_v17 }
 0x609   :  { %v1439_v37 = vadd.f32 1e-05, %v1435_v30 }
 0x60a   :  { %v1438_v61 = vadd.f32 1e-05, %v1434_v35 }
 0x60b   :  { %2391 = vrsqrt.f32 %v1439_v37  ;;  %v1430_v39 = vpop.xlane.xlu1 %1429 }
 0x60c   :  { %2393 = vrsqrt.f32 %v1438_v61  ;;  %v1436_v16 = vmul.f32 0.03125, %v1430_v39 }
 0x60e   :  { %v1440_v40 = vadd.f32 1e-05, %v1436_v16 }
 0x60f   :  { %v1433_v21 = vpop.xlane.xlu0 %1432 }
 0x610   :  { %2395 = vrsqrt.f32 %v1440_v40  ;;  %v1437_v43 = vmul.f32 0.03125, %v1433_v21 }
 0x612   :  { %v1441_v45 = vadd.f32 1e-05, %v1437_v43 }
 0x614   :  { %2397 = vrsqrt.f32 %v1441_v45 }
 0x615   :  { %v2392_v2 = vpop.eup %2391 }
 0x616   :  { %v2394_v47 = vpop.eup %2393  ;;  %v1447_v42 = vmul.f32 %v2392_v2, %v2910_v55 }
 0x617   :  { %v1446_v50 = vmul.f32 %v2394_v47, %v2912_v57  ;;  %v86_v57 = vld [vmem:[#allocation7 + $0xa0] sm:$0xff] }
 0x618   :  { %v1455_v18 = vmul.f32 %v1453_v46, %v1447_v42  ;;  %v2223_v11 = vpack.c.bf16 %v87_v34, %v86_v57 }
 0x619   :  { %v1454_v26 = vmul.f32 %v1453_v46, %v1446_v50 }
 0x61a   :  { %v2396_v29 = vpop.eup %2395  ;;  %v1463_v53 = vadd.f32 %v1461_v0, %v1455_v18  ;;  %2224 = vmatprep.subr.bf16.mxu1 %v2223_v11 }
 0x61b   :  { %v1462_v27 = vadd.f32 %v1461_v0, %v1454_v26  ;;  %v1448_v51 = vmul.f32 %v2396_v29, %v2919_v1  ;;  %2226 = vmatpush3.bf16.msra.mxu1 %v2223_v11 }
 0x61d   :  { %2079 = vmatprep.mubr.msk.f32.mxu0 %vm93_vm0, %v1462_v27  ;;  %v1456_v9 = vmul.f32 %v1453_v46, %v1448_v51 }
 0x61e   :  { %v2398_v5 = vpop.eup %2397  ;;  %2080 = vmatmul.mubr.msk.f32.vlgmr.msra.gmra.mrb[12].mxu0 %vm93_vm0, %v1463_v53 }
 0x61f   :  { %v1464_v54 = vadd.f32 %v1461_v0, %v1456_v9  ;;  %v1449_v36 = vmul.f32 %v2398_v5, %v2924_v28 }
 0x621   :  { %2082 = vmatprep.mubr.msk.f32.mxu0 %vm93_vm0, %v1464_v54  ;;  %v1457_v32 = vmul.f32 %v1453_v46, %v1449_v36 }
 0x623   :  { %v1465_v55 = vadd.f32 %v1461_v0, %v1457_v32 }
 0x625   :  { %2083 = vmatmul.mubr.msk.f32.gmra.mrb[14].mxu0 %vm93_vm0, %v1465_v55 }
 0x6f1   :  { %v2081_v63 = vpop.f32.mrb[12].mxu0 }
 0x6f2   :  { %v1554_v1 = vadd.f32 %v2081_v63, %v1469_v15  ;;  %v1548_v48 = vpop.f32.mrb[13].mxu0 }
 0x6f3   :  { %v1549_v31 = vadd.f32 %v1548_v48, %v1469_v15  ;;  %v1732_v48 = vrot.slane %v2932_v22, %v1731_v62 }
 0x6f4   :  { %v1568_v59 = vmax.f32 %v1554_v1, 0.0  ;;  %v1739_v1 = vsub.s32 7, %v2614_v25 }
 0x6f5   :  { %v1567_v56 = vmax.f32 %v1549_v31, 0.0 }
 0x6f7   :  { %2101 = vmatprep.mubr.msk.f32.mxu1 %vm1575_vm7, %v1567_v56 }
 0x6f8   :  { %v2084_v28 = vpop.f32.mrb[14].mxu0  ;;  %2102 = vmatmul.mubr.msk.f32.vlgmr.msra.gmra.mrb[16].mxu1 %vm1575_vm7, %v1568_v59 }
 0x6f9   :  { %v1564_v60 = vadd.f32 %v2084_v28, %v1469_v15  ;;  %v1558_v8 = vpop.f32.mrb[15].mxu0  ;;  %v1740_v28 = vrot.slane %v2932_v22, %v1739_v1 }
 0x6fa   :  { %v1559_v12 = vadd.f32 %v1558_v8, %v1469_v15 }
 0x6fb   :  { %v1570_v13 = vmax.f32 %v1564_v60, 0.0 }
 0x6fc   :  { %v1569_v4 = vmax.f32 %v1559_v12, 0.0 }
 0x6fe   :  { %2104 = vmatprep.mubr.msk.f32.mxu1 %vm1575_vm7, %v1569_v4 }
 0x6ff   :  { %2105 = vmatmul.mubr.msk.f32.gmra.mrb[18].mxu1 %vm1575_vm7, %v1570_v13 }
 0x7cb   :  { %v2103_v52 = vpop.f32.mrb[16].mxu1 }
 0x7cc   :  { %v1660_v19 = vadd.f32 %v2103_v52, %v1574_v14  ;;  %v1654_v20 = vpop.f32.mrb[17].mxu1 }
 0x7cd   :  { %v1655_v23 = vadd.f32 %v1654_v20, %v1574_v14 }
 0x7ce   :  { %v1674_v10 = vadd.f32 %v1660_v19, %v1463_v53 }
 0x7cf   :  { %v1673_v58 = vadd.f32 %v1655_v23, %v1462_v27 }
 0x7d0   :  { %v1680_v6 = vsel %vm93_vm0, %v1674_v10, 0.0 }
 0x7d1   :  { %1681 = vadd.xlane.f32.xlu0 %v1680_v6  ;;  %v1677_v38 = vsel %vm93_vm0, %v1673_v58, 0.0 }
 0x7d2   :  { %1678 = vadd.xlane.f32.xlu1 %v1677_v38  ;;  %v2106_v44 = vpop.f32.mrb[18].mxu1 }
 0x7d3   :  { %v1670_v24 = vadd.f32 %v2106_v44, %v1574_v14  ;;  %v1664_v3 = vpop.f32.mrb[19].mxu1 }
 0x7d4   :  { %v1665_v49 = vadd.f32 %v1664_v3, %v1574_v14 }
 0x7d5   :  { %v1676_v30 = vadd.f32 %v1670_v24, %v1465_v55 }
 0x7d6   :  { %v1675_v17 = vadd.f32 %v1665_v49, %v1464_v54 }
 0x7d7   :  { %v1686_v35 = vsel %vm93_vm0, %v1676_v30, 0.0 }
 0x7d8   :  { %1687 = vadd.xlane.f32.xlu0 %v1686_v35  ;;  %v1683_v37 = vsel %vm93_vm0, %v1675_v17, 0.0 }
 0x7d9   :  { %1684 = vadd.xlane.f32.xlu1 %v1683_v37 }
 0x85e   :  { %v1682_v61 = vpop.xlane.xlu0 %1681 }
 0x85f   :  { %v1690_v39 = vmul.f32 0.03125, %v1682_v61  ;;  %v1679_v16 = vpop.xlane.xlu1 %1678 }
 0x860   :  { %v1689_v40 = vmul.f32 0.03125, %v1679_v16 }
 0x861   :  { %v1694_v21 = vsub.f32 %v1674_v10, %v1690_v39 }
 0x862   :  { %v1693_v41 = vsub.f32 %v1673_v58, %v1689_v40 }
 0x863   :  { %v1698_v43 = vmul.f32 %v1694_v21, %v1694_v21 }
 0x864   :  { %v1697_v45 = vmul.f32 %v1693_v41, %v1693_v41 }
 0x865   :  { %v1688_v33 = vpop.xlane.xlu0 %1687  ;;  %v1704_v46 = vsel %vm93_vm0, %v1698_v43, 0.0 }
 0x866   :  { %v1692_v2 = vmul.f32 0.03125, %v1688_v33  ;;  %v1685_v47 = vpop.xlane.xlu1 %1684  ;;  %1705 = vadd.xlane.f32.xlu0 %v1704_v46  ;;  %v1701_v42 = vsel %vm93_vm0, %v1697_v45, 0.0 }
 0x867   :  { %v1691_v50 = vmul.f32 0.03125, %v1685_v47  ;;  %1702 = vadd.xlane.f32.xlu1 %v1701_v42 }
 0x868   :  { %v1696_v0 = vsub.f32 %v1676_v30, %v1692_v2 }
 0x869   :  { %v1695_v18 = vsub.f32 %v1675_v17, %v1691_v50 }
 0x86a   :  { %v1700_v26 = vmul.f32 %v1696_v0, %v1696_v0 }
 0x86b   :  { %v1699_v29 = vmul.f32 %v1695_v18, %v1695_v18 }
 0x86c   :  { %v1710_v27 = vsel %vm93_vm0, %v1700_v26, 0.0 }
 0x86d   :  { %1711 = vadd.xlane.f32.xlu0 %v1710_v27  ;;  %v1707_v51 = vsel %vm93_vm0, %v1699_v29, 0.0 }
 0x86e   :  { %1708 = vadd.xlane.f32.xlu1 %v1707_v51 }
 0x8f3   :  { %v1706_v53 = vpop.xlane.xlu0 %1705 }
 0x8f4   :  { %v1714_v9 = vmul.f32 0.03125, %v1706_v53  ;;  %v1703_v5 = vpop.xlane.xlu1 %1702 }
 0x8f5   :  { %v1713_v54 = vmul.f32 0.03125, %v1703_v5 }
 0x8f6   :  { %v1718_v36 = vadd.f32 1e-05, %v1714_v9 }
 0x8f7   :  { %v1717_v32 = vadd.f32 1e-05, %v1713_v54 }
 0x8f8   :  { %2399 = vrsqrt.f32 %v1718_v36 }
 0x8f9   :  { %2401 = vrsqrt.f32 %v1717_v32 }
 0x8fa   :  { %v1712_v55 = vpop.xlane.xlu0 %1711 }
 0x8fb   :  { %v1716_v57 = vmul.f32 0.03125, %v1712_v55  ;;  %v1709_v34 = vpop.xlane.xlu1 %1708 }
 0x8fc   :  { %v1715_v11 = vmul.f32 0.03125, %v1709_v34 }
 0x8fd   :  { %v1720_v15 = vadd.f32 1e-05, %v1716_v57 }
 0x8fe   :  { %v1719_v63 = vadd.f32 1e-05, %v1715_v11 }
 0x8ff   :  { %2403 = vrsqrt.f32 %v1720_v15 }
 0x900   :  { %2405 = vrsqrt.f32 %v1719_v63 }
 0x902   :  { %v2400_v31 = vpop.eup %2399 }
 0x903   :  { %v2402_v56 = vpop.eup %2401  ;;  %v1726_v59 = vmul.f32 %v2400_v31, %v1694_v21 }
 0x904   :  { %v1725_v60 = vmul.f32 %v2402_v56, %v1693_v41 }
 0x905   :  { %v1734_v8 = vmul.f32 %v1732_v48, %v1726_v59 }
 0x906   :  { %v1733_v12 = vmul.f32 %v1732_v48, %v1725_v60 }
 0x907   :  { %v1742_v4 = vadd.f32 %v1740_v28, %v1734_v8 }
 0x908   :  { %v1741_v13 = vadd.f32 %v1740_v28, %v1733_v12 }
 0x909   :  { %v2404_v7 = vpop.eup %2403  ;;  %1746 = vst.msk [vmem:[#allocation8 + $0x8] sm:$0xff] %vm93_vm0, %v1742_v4 }
 0x90a   :  { %v2406_v14 = vpop.eup %2405  ;;  %v1728_v52 = vmul.f32 %v2404_v7, %v1696_v0  ;;  %1745 = vst.msk [vmem:[#allocation8] sm:$0xff] %vm93_vm0, %v1741_v13 }
 0x90b   :  { %v1727_v25 = vmul.f32 %v2406_v14, %v1695_v18 }
 0x90c   :  { %v1736_v19 = vmul.f32 %v1732_v48, %v1728_v52 }
 0x90d   :  { %v1735_v20 = vmul.f32 %v1732_v48, %v1727_v25 }
 0x90e   :  { %v1744_v23 = vadd.f32 %v1740_v28, %v1736_v19 }
 0x90f   :  { %v1743_v10 = vadd.f32 %v1740_v28, %v1735_v20 }
 0x910   :  { %1748 = vst.msk [vmem:[#allocation8 + $0x18] sm:$0xff] %vm93_vm0, %v1744_v23 }
 0x911   :  { %1747 = vst.msk [vmem:[#allocation8 + $0x10] sm:$0xff] %vm93_vm0, %v1743_v10 }
 0x912   :  { %2485 = shalt.err (!%p2482_p0)
}
 0x913   :  { %s2486_s10 = scalar_lea.hbm %s2982_s3, 512 }
 0x914   :  { %p2487_p1 = scmp.ne.s32.totalorder %s2982_s3, %s2486_s10  ;;  %p2490_p2 = scmp.lt.u32.totalorder %s2486_s10, %s2982_s3 }
 0x916   :  { %p2492_p3 = pnand %p2490_p2, %p2487_p1 }
 0x918   :  { %2495 = shalt.err (!%p2492_p3)
}
 0x919   :  { %1760 = dma.vmem_to_hbm [thread:$0]  %s1755_s7, 512, %s2982_s3, [#allocation4], %s2504_s24, %s2504_s24, %s2505_s25  }
 0x91a   :  { %2500 = dma.done.wait [#allocation4], 512  }
 0x91b   :  { %2501 = vsyncadd [#allocation4], 4294966784 }
 0x91c   :  { %1764 = vsyncpa [#allocation3], 1 }
 0x91d   :  { %1765 = vsyncpa [#allocation6], 1 }
 0x91e   :  { %1766 = vsyncpa [#allocation4], 1 }

</bundles_post_ra>
